<compile_context>
chip_gen: v5e
topology: v5e:2x2
jax: 0.10.0
libtpu: 0.0.40
codegen_flags: <defaults>
</compile_context>

<pallas_src>
import functools

import jax
import jax.numpy as jnp
from jax.experimental import pallas as pl
from jax.experimental.pallas import tpu as pltpu


def mcbam_kernel(x_ref, y_ref, w1t_ref, w2t_ref, wmaps_ref, o_ref, *,
                 repeat, shifts):
    # x_ref/y_ref/o_ref blocks: (Nb, C, H*W) lane-dense tiles.
    nb, _, hw = x_ref.shape
    kt = len(shifts)

    # initialfuse == 'add'; accumulate in f32.
    # (bf16 inputs still DMA as bf16 blocks; compute stays f32 for accuracy.)
    z0 = x_ref[...].astype(jnp.float32) + y_ref[...].astype(jnp.float32)

    w1t = w1t_ref[...]            # (C, Cr)   = fc1.weight.T
    w2t = w2t_ref[...]            # (Cr, C)   = fc2.weight.T

    # Per-tap spatial weight maps with the 7x7 zero-padding mask already folded
    # in: wmaps[t, 0] = k_avg[t] * valid_t, wmaps[t, 1] = k_max[t] * valid_t.
    # Broadcast across the Nb batch rows ONCE (outside the repeat loop) and lay
    # out to match the sublane-stacked [avg; max] maps used in the tap loop.
    w = wmaps_ref[...]                                             # (KT, 2, HW)
    wa_b = jnp.broadcast_to(w[:, 0, None, :], (kt, nb, hw))        # avg taps
    wm_b = jnp.broadcast_to(w[:, 1, None, :], (kt, nb, hw))        # max taps
    wb = jnp.concatenate([wa_b, wm_b], axis=1)                     # (KT, 2Nb, HW)

    def cbam_block(z):
        # ---------------- channel attention ----------------
        avg_c = jnp.mean(z, axis=2)                     # (Nb, C) cross-lane reduce
        max_c = jnp.max(z, axis=2)                      # (Nb, C)
        p = jnp.concatenate([avg_c, max_c], axis=0)     # (2Nb, C): one MLP pass
        h = jnp.maximum(
            jnp.dot(p, w1t, preferred_element_type=jnp.float32), 0.0)
        q = jnp.dot(h, w2t, preferred_element_type=jnp.float32)    # (2Nb, C)
        ca = jax.nn.sigmoid(q[:nb] + q[nb:])            # (Nb, C)
        z = z * ca[:, :, None]

        # ---------------- spatial attention ----------------
        a = jnp.mean(z, axis=1)                         # (Nb, HW) channel mean
        m = jnp.max(z, axis=1)                          # (Nb, HW) channel max
        s = jnp.concatenate([a, m], axis=0)             # (2Nb, HW) sublane stack

        # 7x7 zero-padded conv over [avg, max]: one XLU roll of the stacked maps
        # per tap + one VPU FMA against the mask-folded weight map.  No selects,
        # compares or per-tap broadcasts inside the loop.
        acc2 = jnp.zeros((2 * nb, hw), jnp.float32)
        for t in range(kt):
            sh = shifts[t]
            rolled = s if sh == 0 else pltpu.roll(s, sh, 1)
            acc2 = acc2 + rolled * wb[t]
        acc = acc2[:nb] + acc2[nb:]                     # fold avg/max halves

        sa = jax.nn.sigmoid(acc)                        # (Nb, HW)
        return z * sa[:, None, :]

    z = z0
    if repeat <= 2:
        for _ in range(repeat):                         # short: keep unrolled
            z = cbam_block(z)
    else:
        # large repeat counts: bound vreg live ranges / compile time
        z = jax.lax.fori_loop(0, repeat, lambda _, zz: cbam_block(zz), z)

    o_ref[...] = z.astype(o_ref.dtype)


@functools.lru_cache(maxsize=1)
def _tpu_geometry():
    """Best-effort (vmem_bytes, tensorcores_per_chip) query.

    Falls back to v7x-safe defaults (64 MiB VMEM, 2 TensorCores) when the
    query is unavailable.  Single-TC generations (v5e/v6e) expose 128 MiB of
    VMEM, which the heuristic maps to 1 core.
    """
    vmem = None
    cores = None
    try:
        info = pltpu.get_tpu_info()
        for name in ("vmem_capacity_bytes", "vmem_bytes", "vmem_size_bytes"):
            v = getattr(info, name, None)
            if v:
                vmem = int(v)
                break
        for name in ("num_tensorcores", "tensorcore_count", "num_cores",
                     "core_count", "cores_per_chip"):
            v = getattr(info, name, None)
            if v:
                cores = int(v)
                break
    except Exception:
        pass
    if vmem is None:
        vmem = 64 * 1024 * 1024
    if cores is None:
        # v7x: 64 MiB VMEM per TC, 2 TCs. v5e/v6e: 128 MiB, single TC.
        cores = 2 if vmem <= 96 * 1024 * 1024 else 1
    return vmem, cores


def _pick_block_batch(n, c, hw, kt, in_bytes, vmem_limit, num_cores):
    """Batch elements per grid step (generation-aware).

    Budgets the real per-step residency: x/y/out double-buffered (6 block
    copies, input dtype) + ~3 block-sized f32 intermediates (z, gated z, conv
    accumulator) + the Nb-broadcast spatial weight stack, against ~half of the
    scoped-VMEM limit.  Single-TC chips (v5e/v6e) take the largest block that
    fits (grid is a serial loop there — splitting is pure overhead); multi-TC
    chips (v7x) keep >=2, preferably even, grid steps so both cores get work.
    """
    cdiv = lambda a, b: -(-a // b)
    budget = max(vmem_limit // 2, 1 << 20)
    fixed = 2 * kt * 2 * hw * 4                       # double-buffered weight-map input
    per_batch = hw * (c * (6 * in_bytes + 3 * 4) + 2 * kt * 4)
    nb = max(1, min(n, max(0, budget - fixed) // per_batch))
    if num_cores >= 2 and n >= 2:
        nb = min(nb, cdiv(n, 2))                      # >= 2 grid steps for 2 TCs
        if cdiv(n, nb) % 2:                           # prefer an even step count
            for cand in range(nb - 1, max(1, (3 * nb) // 4) - 1, -1):
                if cdiv(n, cand) % 2 == 0:
                    nb = cand
                    break
    return nb


@functools.partial(jax.jit, static_argnames=("repeat",))
def mcbam_forward(x, y, w1, w2, ksp, repeat=1):
    n, c, hh, ww = x.shape
    hw = hh * ww
    cr = w1.shape[0]
    _, kh, kw = ksp.shape
    ph, pw = kh // 2, kw // 2
    kt = kh * kw

    # Lane-dense layout: collapse (H, W) -> H*W (contiguous reshape, free).
    xf = x.reshape(n, c, hw)
    yf = y.reshape(n, c, hw)
    w1t = jnp.asarray(w1, jnp.float32).T                # (C, Cr)
    w2t = jnp.asarray(w2, jnp.float32).T                # (Cr, C)

    # Fold the 7x7 zero-padding masks into per-tap weight maps (built once in
    # the wrapper): wmaps[t, 0] = k_avg[t] * valid_t, wmaps[t, 1] = k_max[t] * valid_t.
    pos = jnp.arange(hw, dtype=jnp.int32)
    row = pos // ww
    col = pos % ww
    ksp_f = jnp.asarray(ksp, jnp.float32)
    wrows = []
    for i in range(kh):
        dh = i - ph
        row_ok = (row >= -dh) & (row < hh - dh)
        for j in range(kw):
            dw = j - pw
            valid = (row_ok & (col >= -dw) & (col < ww - dw)).astype(jnp.float32)
            wrows.append(jnp.stack([ksp_f[0, i, j] * valid,
                                    ksp_f[1, i, j] * valid]))      # (2, HW)
    wmaps = jnp.stack(wrows)                            # (KH*KW, 2, HW)

    # Static per-tap lane shifts: output pixel p reads source pixel p + dh*W + dw.
    shifts = tuple((-((i - ph) * ww + (j - pw))) % hw
                   for i in range(kh) for j in range(kw))

    # Generation-aware block sizing + VMEM limit.
    vmem_phys, num_cores = _tpu_geometry()
    vmem_limit = int(max(min(vmem_phys * 3 // 4, 96 * 1024 * 1024),
                         32 * 1024 * 1024))
    in_bytes = jnp.dtype(x.dtype).itemsize
    nb = _pick_block_batch(n, c, hw, kt, in_bytes, vmem_limit, num_cores)

    # grid = cdiv(N, nb) with zero padding (no divisibility-driven nb collapse).
    steps = -(-n // nb)
    n_pad = steps * nb
    if n_pad != n:
        pad = ((0, n_pad - n), (0, 0), (0, 0))
        xf = jnp.pad(xf, pad)
        yf = jnp.pad(yf, pad)

    kernel = functools.partial(mcbam_kernel, repeat=repeat, shifts=shifts)

    out = pl.pallas_call(
        kernel,
        out_shape=jax.ShapeDtypeStruct((n_pad, c, hw), x.dtype),
        grid_spec=pltpu.PrefetchScalarGridSpec(
            num_scalar_prefetch=0,
            grid=(steps,),
            in_specs=[
                pl.BlockSpec((nb, c, hw), lambda g: (g, 0, 0)),      # x
                pl.BlockSpec((nb, c, hw), lambda g: (g, 0, 0)),      # y
                pl.BlockSpec((c, cr), lambda g: (0, 0)),             # w1.T
                pl.BlockSpec((cr, c), lambda g: (0, 0)),             # w2.T
                pl.BlockSpec((kt, 2, hw), lambda g: (0, 0, 0)),      # tap weight maps
            ],
            out_specs=pl.BlockSpec((nb, c, hw), lambda g: (g, 0, 0)),
        ),
        compiler_params=pltpu.CompilerParams(
            dimension_semantics=("parallel",),
            vmem_limit_bytes=vmem_limit),
    )(xf, yf, w1t, w2t, wmaps)
    return out[:n].reshape(n, c, hh, ww)


def mcbam_ref(x, y, w1, w2, ksp, repeat=1):
    """Pure-JAX reference matching the PyTorch forward (initialfuse='add')."""
    z = x + y
    for _ in range(repeat):
        avg = jnp.mean(z, axis=(2, 3))                  # (N, C)
        mx = jnp.max(z, axis=(2, 3))                    # (N, C)

        def mlp(v):
            return jnp.maximum(v @ w1.T, 0.0) @ w2.T

        ca = jax.nn.sigmoid(mlp(avg) + mlp(mx))[:, :, None, None]
        z = z * ca

        a = jnp.mean(z, axis=1, keepdims=True)
        m = jnp.max(z, axis=1, keepdims=True)
        s = jnp.concatenate([a, m], axis=1)             # (N, 2, H, W)
        conv = jax.lax.conv_general_dilated(
            s, ksp[None],                               # (1, 2, 7, 7)
            window_strides=(1, 1), padding=((3, 3), (3, 3)),
            dimension_numbers=('NCHW', 'OIHW', 'NCHW'))
        z = z * jax.nn.sigmoid(conv)
    return z


if __name__ == "__main__":
    key = jax.random.PRNGKey(0)
    N, C, H, W = 2, 4, 16, 16      # batch, channels, spatial
    r = 1                          # reduction ratio
    Cr = max(C // r, 1)

    kx, ky, k1, k2, ks = jax.random.split(key, 5)
    x = jax.random.normal(kx, (N, C, H, W), jnp.float32)
    y = jax.random.normal(ky, (N, C, H, W), jnp.float32)
    # deterministic synthetic parameters (shapes from the module's __init__)
    w1 = 0.3 * jax.random.normal(k1, (Cr, C), jnp.float32)     # fc1: C -> C//r
    w2 = 0.3 * jax.random.normal(k2, (C, Cr), jnp.float32)     # fc2: C//r -> C
    ksp = 0.1 * jax.random.normal(ks, (2, 7, 7), jnp.float32)  # spatial 7x7

    # t=1, 2 exercise the unrolled path; t=3 exercises the in-kernel fori_loop.
    for t in (1, 2, 3):
        out = jax.block_until_ready(mcbam_forward(x, y, w1, w2, ksp, repeat=t))
        ref = mcbam_ref(x, y, w1, w2, ksp, repeat=t)
        assert out.shape == (N, C, H, W)
        err = float(jnp.max(jnp.abs(out - ref)))
        assert jnp.allclose(out, ref, atol=1e-4, rtol=1e-3), (t, err)

    print("KERNEL_OK")
</pallas_src>

<mosaic_0001>
module attributes {stable_mosaic.version = 11 : i64} {
  func.func @mcbam_kernel(%arg0: i32, %arg1: memref<1x4x256xf32, #tpu.memory_space<vmem>>, %arg2: memref<1x4x256xf32, #tpu.memory_space<vmem>>, %arg3: memref<4x4xf32, #tpu.memory_space<vmem>>, %arg4: memref<4x4xf32, #tpu.memory_space<vmem>>, %arg5: memref<49x2x256xf32, #tpu.memory_space<vmem>>, %arg6: memref<1x4x256xf32, #tpu.memory_space<vmem>>) attributes {dimension_semantics = [#tpu.dimension_semantics<parallel>], iteration_bounds = array<i64: 2>, scalar_prefetch = 0 : i64, scratch_operands = 0 : i64, tpu.core_type = #tpu.core_type<tc>, window_params = [{transform_indices = @transform_0, window_bounds = array<i64: 1, 4, 256>}, {transform_indices = @transform_1, window_bounds = array<i64: 1, 4, 256>}, {pipeline_mode = #tpu.pipeline_mode<synchronous>, transform_indices = @transform_2, window_bounds = array<i64: 4, 4>}, {pipeline_mode = #tpu.pipeline_mode<synchronous>, transform_indices = @transform_3, window_bounds = array<i64: 4, 4>}, {pipeline_mode = #tpu.pipeline_mode<synchronous>, transform_indices = @transform_4, window_bounds = array<i64: 49, 2, 256>}, {transform_indices = @transform_5, window_bounds = array<i64: 1, 4, 256>}]} {
    %c0 = arith.constant 0 : index
    %c0_0 = arith.constant 0 : index
    %c0_1 = arith.constant 0 : index
    %0 = vector.load %arg1[%c0, %c0_0, %c0_1] : memref<1x4x256xf32, #tpu.memory_space<vmem>>, vector<1x4x256xf32>
    %c0_2 = arith.constant 0 : index
    %c0_3 = arith.constant 0 : index
    %c0_4 = arith.constant 0 : index
    %1 = vector.load %arg2[%c0_2, %c0_3, %c0_4] : memref<1x4x256xf32, #tpu.memory_space<vmem>>, vector<1x4x256xf32>
    %2 = arith.addf %0, %1 : vector<1x4x256xf32>
    %c0_5 = arith.constant 0 : index
    %c0_6 = arith.constant 0 : index
    %3 = vector.load %arg3[%c0_5, %c0_6] : memref<4x4xf32, #tpu.memory_space<vmem>>, vector<4x4xf32>
    %c0_7 = arith.constant 0 : index
    %c0_8 = arith.constant 0 : index
    %4 = vector.load %arg4[%c0_7, %c0_8] : memref<4x4xf32, #tpu.memory_space<vmem>>, vector<4x4xf32>
    %c0_9 = arith.constant 0 : index
    %c0_10 = arith.constant 0 : index
    %c0_11 = arith.constant 0 : index
    %5 = vector.load %arg5[%c0_9, %c0_10, %c0_11] : memref<49x2x256xf32, #tpu.memory_space<vmem>>, vector<49x2x256xf32>
    %6 = vector.extract_strided_slice %5 {offsets = [0, 0, 0], sizes = [49, 1, 256], strides = [1, 1, 1]} : vector<49x2x256xf32> to vector<49x1x256xf32>
    %7 = vector.shape_cast %6 : vector<49x1x256xf32> to vector<49x256xf32>
    %8 = vector.shape_cast %7 : vector<49x256xf32> to vector<49x1x256xf32>
    %9 = vector.extract_strided_slice %5 {offsets = [0, 1, 0], sizes = [49, 1, 256], strides = [1, 1, 1]} : vector<49x2x256xf32> to vector<49x1x256xf32>
    %10 = vector.shape_cast %9 : vector<49x1x256xf32> to vector<49x256xf32>
    %11 = vector.shape_cast %10 : vector<49x256xf32> to vector<49x1x256xf32>
    %12 = tpu.concatenate %8, %11 in 1 : vector<49x1x256xf32>, vector<49x1x256xf32> -> vector<49x2x256xf32>
    %cst = arith.constant dense<0.000000e+00> : vector<1x4xf32>
    %13 = vector.multi_reduction <add>, %2, %cst [2] : vector<1x4x256xf32> to vector<1x4xf32>
    %cst_12 = arith.constant 2.560000e+02 : f32
    %14 = vector.broadcast %cst_12 : f32 to vector<1x4xf32>
    %15 = arith.divf %13, %14 : vector<1x4xf32>
    %cst_13 = arith.constant dense<0xFF800000> : vector<1x4xf32>
    %16 = vector.multi_reduction <maximumf>, %2, %cst_13 [2] : vector<1x4x256xf32> to vector<1x4xf32>
    %17 = tpu.concatenate %15, %16 in 0 : vector<1x4xf32>, vector<1x4xf32> -> vector<2x4xf32>
    %cst_14 = arith.constant dense<0.000000e+00> : vector<2x4xf32>
    %18 = tpu.matmul %17, %3, %cst_14 {dimension_numbers = #tpu.dot_dimension_numbers<[1], [0], [0], [1], [0, 0, 1, 1], [], []>} : vector<2x4xf32>, vector<4x4xf32>, vector<2x4xf32> -> vector<2x4xf32>
    %cst_15 = arith.constant 0.000000e+00 : f32
    %19 = vector.broadcast %cst_15 : f32 to vector<2x4xf32>
    %20 = arith.maximumf %18, %19 : vector<2x4xf32>
    %cst_16 = arith.constant dense<0.000000e+00> : vector<2x4xf32>
    %21 = tpu.matmul %20, %4, %cst_16 {dimension_numbers = #tpu.dot_dimension_numbers<[1], [0], [0], [1], [0, 0, 1, 1], [], []>} : vector<2x4xf32>, vector<4x4xf32>, vector<2x4xf32> -> vector<2x4xf32>
    %22 = vector.extract_strided_slice %21 {offsets = [0, 0], sizes = [1, 4], strides = [1, 1]} : vector<2x4xf32> to vector<1x4xf32>
    %23 = vector.extract_strided_slice %21 {offsets = [1, 0], sizes = [1, 4], strides = [1, 1]} : vector<2x4xf32> to vector<1x4xf32>
    %24 = arith.addf %22, %23 : vector<1x4xf32>
    %25 = arith.negf %24 : vector<1x4xf32>
    %26 = math.exp %25 : vector<1x4xf32>
    %cst_17 = arith.constant 1.000000e+00 : f32
    %27 = vector.broadcast %cst_17 : f32 to vector<1x4xf32>
    %28 = arith.addf %27, %26 : vector<1x4xf32>
    %29 = arith.divf %27, %28 : vector<1x4xf32>
    %30 = vector.shape_cast %29 : vector<1x4xf32> to vector<1x4x1xf32>
    %31 = vector.broadcast %30 : vector<1x4x1xf32> to vector<1x4x256xf32>
    %32 = arith.mulf %2, %31 : vector<1x4x256xf32>
    %cst_18 = arith.constant dense<0.000000e+00> : vector<1x256xf32>
    %33 = vector.multi_reduction <add>, %32, %cst_18 [1] : vector<1x4x256xf32> to vector<1x256xf32>
    %cst_19 = arith.constant 4.000000e+00 : f32
    %34 = vector.broadcast %cst_19 : f32 to vector<1x256xf32>
    %35 = arith.divf %33, %34 : vector<1x256xf32>
    %cst_20 = arith.constant dense<0xFF800000> : vector<1x256xf32>
    %36 = vector.multi_reduction <maximumf>, %32, %cst_20 [1] : vector<1x4x256xf32> to vector<1x256xf32>
    %37 = tpu.concatenate %35, %36 in 0 : vector<1x256xf32>, vector<1x256xf32> -> vector<2x256xf32>
    %cst_21 = arith.constant 0.000000e+00 : f32
    %38 = vector.broadcast %cst_21 : f32 to vector<2x256xf32>
    %c51_i32 = arith.constant 51 : i32
    %39 = tpu.dynamic_rotate %37 by %c51_i32 dim 1 : vector<2x256xf32>, i32 -> vector<2x256xf32>
    %40 = vector.extract_strided_slice %12 {offsets = [0, 0, 0], sizes = [1, 2, 256], strides = [1, 1, 1]} : vector<49x2x256xf32> to vector<1x2x256xf32>
    %41 = vector.shape_cast %40 : vector<1x2x256xf32> to vector<2x256xf32>
    %42 = arith.mulf %39, %41 : vector<2x256xf32>
    %43 = arith.addf %38, %42 : vector<2x256xf32>
    %c50_i32 = arith.constant 50 : i32
    %44 = tpu.dynamic_rotate %37 by %c50_i32 dim 1 : vector<2x256xf32>, i32 -> vector<2x256xf32>
    %45 = vector.extract_strided_slice %12 {offsets = [1, 0, 0], sizes = [1, 2, 256], strides = [1, 1, 1]} : vector<49x2x256xf32> to vector<1x2x256xf32>
    %46 = vector.shape_cast %45 : vector<1x2x256xf32> to vector<2x256xf32>
    %47 = arith.mulf %44, %46 : vector<2x256xf32>
    %48 = arith.addf %43, %47 : vector<2x256xf32>
    %c49_i32 = arith.constant 49 : i32
    %49 = tpu.dynamic_rotate %37 by %c49_i32 dim 1 : vector<2x256xf32>, i32 -> vector<2x256xf32>
    %50 = vector.extract_strided_slice %12 {offsets = [2, 0, 0], sizes = [1, 2, 256], strides = [1, 1, 1]} : vector<49x2x256xf32> to vector<1x2x256xf32>
    %51 = vector.shape_cast %50 : vector<1x2x256xf32> to vector<2x256xf32>
    %52 = arith.mulf %49, %51 : vector<2x256xf32>
    %53 = arith.addf %48, %52 : vector<2x256xf32>
    %c48_i32 = arith.constant 48 : i32
    %54 = tpu.dynamic_rotate %37 by %c48_i32 dim 1 : vector<2x256xf32>, i32 -> vector<2x256xf32>
    %55 = vector.extract_strided_slice %12 {offsets = [3, 0, 0], sizes = [1, 2, 256], strides = [1, 1, 1]} : vector<49x2x256xf32> to vector<1x2x256xf32>
    %56 = vector.shape_cast %55 : vector<1x2x256xf32> to vector<2x256xf32>
    %57 = arith.mulf %54, %56 : vector<2x256xf32>
    %58 = arith.addf %53, %57 : vector<2x256xf32>
    %c47_i32 = arith.constant 47 : i32
    %59 = tpu.dynamic_rotate %37 by %c47_i32 dim 1 : vector<2x256xf32>, i32 -> vector<2x256xf32>
    %60 = vector.extract_strided_slice %12 {offsets = [4, 0, 0], sizes = [1, 2, 256], strides = [1, 1, 1]} : vector<49x2x256xf32> to vector<1x2x256xf32>
    %61 = vector.shape_cast %60 : vector<1x2x256xf32> to vector<2x256xf32>
    %62 = arith.mulf %59, %61 : vector<2x256xf32>
    %63 = arith.addf %58, %62 : vector<2x256xf32>
    %c46_i32 = arith.constant 46 : i32
    %64 = tpu.dynamic_rotate %37 by %c46_i32 dim 1 : vector<2x256xf32>, i32 -> vector<2x256xf32>
    %65 = vector.extract_strided_slice %12 {offsets = [5, 0, 0], sizes = [1, 2, 256], strides = [1, 1, 1]} : vector<49x2x256xf32> to vector<1x2x256xf32>
    %66 = vector.shape_cast %65 : vector<1x2x256xf32> to vector<2x256xf32>
    %67 = arith.mulf %64, %66 : vector<2x256xf32>
    %68 = arith.addf %63, %67 : vector<2x256xf32>
    %c45_i32 = arith.constant 45 : i32
    %69 = tpu.dynamic_rotate %37 by %c45_i32 dim 1 : vector<2x256xf32>, i32 -> vector<2x256xf32>
    %70 = vector.extract_strided_slice %12 {offsets = [6, 0, 0], sizes = [1, 2, 256], strides = [1, 1, 1]} : vector<49x2x256xf32> to vector<1x2x256xf32>
    %71 = vector.shape_cast %70 : vector<1x2x256xf32> to vector<2x256xf32>
    %72 = arith.mulf %69, %71 : vector<2x256xf32>
    %73 = arith.addf %68, %72 : vector<2x256xf32>
    %c35_i32 = arith.constant 35 : i32
    %74 = tpu.dynamic_rotate %37 by %c35_i32 dim 1 : vector<2x256xf32>, i32 -> vector<2x256xf32>
    %75 = vector.extract_strided_slice %12 {offsets = [7, 0, 0], sizes = [1, 2, 256], strides = [1, 1, 1]} : vector<49x2x256xf32> to vector<1x2x256xf32>
    %76 = vector.shape_cast %75 : vector<1x2x256xf32> to vector<2x256xf32>
    %77 = arith.mulf %74, %76 : vector<2x256xf32>
    %78 = arith.addf %73, %77 : vector<2x256xf32>
    %c34_i32 = arith.constant 34 : i32
    %79 = tpu.dynamic_rotate %37 by %c34_i32 dim 1 : vector<2x256xf32>, i32 -> vector<2x256xf32>
    %80 = vector.extract_strided_slice %12 {offsets = [8, 0, 0], sizes = [1, 2, 256], strides = [1, 1, 1]} : vector<49x2x256xf32> to vector<1x2x256xf32>
    %81 = vector.shape_cast %80 : vector<1x2x256xf32> to vector<2x256xf32>
    %82 = arith.mulf %79, %81 : vector<2x256xf32>
    %83 = arith.addf %78, %82 : vector<2x256xf32>
    %c33_i32 = arith.constant 33 : i32
    %84 = tpu.dynamic_rotate %37 by %c33_i32 dim 1 : vector<2x256xf32>, i32 -> vector<2x256xf32>
    %85 = vector.extract_strided_slice %12 {offsets = [9, 0, 0], sizes = [1, 2, 256], strides = [1, 1, 1]} : vector<49x2x256xf32> to vector<1x2x256xf32>
    %86 = vector.shape_cast %85 : vector<1x2x256xf32> to vector<2x256xf32>
    %87 = arith.mulf %84, %86 : vector<2x256xf32>
    %88 = arith.addf %83, %87 : vector<2x256xf32>
    %c32_i32 = arith.constant 32 : i32
    %89 = tpu.dynamic_rotate %37 by %c32_i32 dim 1 : vector<2x256xf32>, i32 -> vector<2x256xf32>
    %90 = vector.extract_strided_slice %12 {offsets = [10, 0, 0], sizes = [1, 2, 256], strides = [1, 1, 1]} : vector<49x2x256xf32> to vector<1x2x256xf32>
    %91 = vector.shape_cast %90 : vector<1x2x256xf32> to vector<2x256xf32>
    %92 = arith.mulf %89, %91 : vector<2x256xf32>
    %93 = arith.addf %88, %92 : vector<2x256xf32>
    %c31_i32 = arith.constant 31 : i32
    %94 = tpu.dynamic_rotate %37 by %c31_i32 dim 1 : vector<2x256xf32>, i32 -> vector<2x256xf32>
    %95 = vector.extract_strided_slice %12 {offsets = [11, 0, 0], sizes = [1, 2, 256], strides = [1, 1, 1]} : vector<49x2x256xf32> to vector<1x2x256xf32>
    %96 = vector.shape_cast %95 : vector<1x2x256xf32> to vector<2x256xf32>
    %97 = arith.mulf %94, %96 : vector<2x256xf32>
    %98 = arith.addf %93, %97 : vector<2x256xf32>
    %c30_i32 = arith.constant 30 : i32
    %99 = tpu.dynamic_rotate %37 by %c30_i32 dim 1 : vector<2x256xf32>, i32 -> vector<2x256xf32>
    %100 = vector.extract_strided_slice %12 {offsets = [12, 0, 0], sizes = [1, 2, 256], strides = [1, 1, 1]} : vector<49x2x256xf32> to vector<1x2x256xf32>
    %101 = vector.shape_cast %100 : vector<1x2x256xf32> to vector<2x256xf32>
    %102 = arith.mulf %99, %101 : vector<2x256xf32>
    %103 = arith.addf %98, %102 : vector<2x256xf32>
    %c29_i32 = arith.constant 29 : i32
    %104 = tpu.dynamic_rotate %37 by %c29_i32 dim 1 : vector<2x256xf32>, i32 -> vector<2x256xf32>
    %105 = vector.extract_strided_slice %12 {offsets = [13, 0, 0], sizes = [1, 2, 256], strides = [1, 1, 1]} : vector<49x2x256xf32> to vector<1x2x256xf32>
    %106 = vector.shape_cast %105 : vector<1x2x256xf32> to vector<2x256xf32>
    %107 = arith.mulf %104, %106 : vector<2x256xf32>
    %108 = arith.addf %103, %107 : vector<2x256xf32>
    %c19_i32 = arith.constant 19 : i32
    %109 = tpu.dynamic_rotate %37 by %c19_i32 dim 1 : vector<2x256xf32>, i32 -> vector<2x256xf32>
    %110 = vector.extract_strided_slice %12 {offsets = [14, 0, 0], sizes = [1, 2, 256], strides = [1, 1, 1]} : vector<49x2x256xf32> to vector<1x2x256xf32>
    %111 = vector.shape_cast %110 : vector<1x2x256xf32> to vector<2x256xf32>
    %112 = arith.mulf %109, %111 : vector<2x256xf32>
    %113 = arith.addf %108, %112 : vector<2x256xf32>
    %c18_i32 = arith.constant 18 : i32
    %114 = tpu.dynamic_rotate %37 by %c18_i32 dim 1 : vector<2x256xf32>, i32 -> vector<2x256xf32>
    %115 = vector.extract_strided_slice %12 {offsets = [15, 0, 0], sizes = [1, 2, 256], strides = [1, 1, 1]} : vector<49x2x256xf32> to vector<1x2x256xf32>
    %116 = vector.shape_cast %115 : vector<1x2x256xf32> to vector<2x256xf32>
    %117 = arith.mulf %114, %116 : vector<2x256xf32>
    %118 = arith.addf %113, %117 : vector<2x256xf32>
    %c17_i32 = arith.constant 17 : i32
    %119 = tpu.dynamic_rotate %37 by %c17_i32 dim 1 : vector<2x256xf32>, i32 -> vector<2x256xf32>
    %120 = vector.extract_strided_slice %12 {offsets = [16, 0, 0], sizes = [1, 2, 256], strides = [1, 1, 1]} : vector<49x2x256xf32> to vector<1x2x256xf32>
    %121 = vector.shape_cast %120 : vector<1x2x256xf32> to vector<2x256xf32>
    %122 = arith.mulf %119, %121 : vector<2x256xf32>
    %123 = arith.addf %118, %122 : vector<2x256xf32>
    %c16_i32 = arith.constant 16 : i32
    %124 = tpu.dynamic_rotate %37 by %c16_i32 dim 1 : vector<2x256xf32>, i32 -> vector<2x256xf32>
    %125 = vector.extract_strided_slice %12 {offsets = [17, 0, 0], sizes = [1, 2, 256], strides = [1, 1, 1]} : vector<49x2x256xf32> to vector<1x2x256xf32>
    %126 = vector.shape_cast %125 : vector<1x2x256xf32> to vector<2x256xf32>
    %127 = arith.mulf %124, %126 : vector<2x256xf32>
    %128 = arith.addf %123, %127 : vector<2x256xf32>
    %c15_i32 = arith.constant 15 : i32
    %129 = tpu.dynamic_rotate %37 by %c15_i32 dim 1 : vector<2x256xf32>, i32 -> vector<2x256xf32>
    %130 = vector.extract_strided_slice %12 {offsets = [18, 0, 0], sizes = [1, 2, 256], strides = [1, 1, 1]} : vector<49x2x256xf32> to vector<1x2x256xf32>
    %131 = vector.shape_cast %130 : vector<1x2x256xf32> to vector<2x256xf32>
    %132 = arith.mulf %129, %131 : vector<2x256xf32>
    %133 = arith.addf %128, %132 : vector<2x256xf32>
    %c14_i32 = arith.constant 14 : i32
    %134 = tpu.dynamic_rotate %37 by %c14_i32 dim 1 : vector<2x256xf32>, i32 -> vector<2x256xf32>
    %135 = vector.extract_strided_slice %12 {offsets = [19, 0, 0], sizes = [1, 2, 256], strides = [1, 1, 1]} : vector<49x2x256xf32> to vector<1x2x256xf32>
    %136 = vector.shape_cast %135 : vector<1x2x256xf32> to vector<2x256xf32>
    %137 = arith.mulf %134, %136 : vector<2x256xf32>
    %138 = arith.addf %133, %137 : vector<2x256xf32>
    %c13_i32 = arith.constant 13 : i32
    %139 = tpu.dynamic_rotate %37 by %c13_i32 dim 1 : vector<2x256xf32>, i32 -> vector<2x256xf32>
    %140 = vector.extract_strided_slice %12 {offsets = [20, 0, 0], sizes = [1, 2, 256], strides = [1, 1, 1]} : vector<49x2x256xf32> to vector<1x2x256xf32>
    %141 = vector.shape_cast %140 : vector<1x2x256xf32> to vector<2x256xf32>
    %142 = arith.mulf %139, %141 : vector<2x256xf32>
    %143 = arith.addf %138, %142 : vector<2x256xf32>
    %c3_i32 = arith.constant 3 : i32
    %144 = tpu.dynamic_rotate %37 by %c3_i32 dim 1 : vector<2x256xf32>, i32 -> vector<2x256xf32>
    %145 = vector.extract_strided_slice %12 {offsets = [21, 0, 0], sizes = [1, 2, 256], strides = [1, 1, 1]} : vector<49x2x256xf32> to vector<1x2x256xf32>
    %146 = vector.shape_cast %145 : vector<1x2x256xf32> to vector<2x256xf32>
    %147 = arith.mulf %144, %146 : vector<2x256xf32>
    %148 = arith.addf %143, %147 : vector<2x256xf32>
    %c2_i32 = arith.constant 2 : i32
    %149 = tpu.dynamic_rotate %37 by %c2_i32 dim 1 : vector<2x256xf32>, i32 -> vector<2x256xf32>
    %150 = vector.extract_strided_slice %12 {offsets = [22, 0, 0], sizes = [1, 2, 256], strides = [1, 1, 1]} : vector<49x2x256xf32> to vector<1x2x256xf32>
    %151 = vector.shape_cast %150 : vector<1x2x256xf32> to vector<2x256xf32>
    %152 = arith.mulf %149, %151 : vector<2x256xf32>
    %153 = arith.addf %148, %152 : vector<2x256xf32>
    %c1_i32 = arith.constant 1 : i32
    %154 = tpu.dynamic_rotate %37 by %c1_i32 dim 1 : vector<2x256xf32>, i32 -> vector<2x256xf32>
    %155 = vector.extract_strided_slice %12 {offsets = [23, 0, 0], sizes = [1, 2, 256], strides = [1, 1, 1]} : vector<49x2x256xf32> to vector<1x2x256xf32>
    %156 = vector.shape_cast %155 : vector<1x2x256xf32> to vector<2x256xf32>
    %157 = arith.mulf %154, %156 : vector<2x256xf32>
    %158 = arith.addf %153, %157 : vector<2x256xf32>
    %159 = vector.extract_strided_slice %12 {offsets = [24, 0, 0], sizes = [1, 2, 256], strides = [1, 1, 1]} : vector<49x2x256xf32> to vector<1x2x256xf32>
    %160 = vector.shape_cast %159 : vector<1x2x256xf32> to vector<2x256xf32>
    %161 = arith.mulf %37, %160 : vector<2x256xf32>
    %162 = arith.addf %158, %161 : vector<2x256xf32>
    %c255_i32 = arith.constant 255 : i32
    %163 = tpu.dynamic_rotate %37 by %c255_i32 dim 1 : vector<2x256xf32>, i32 -> vector<2x256xf32>
    %164 = vector.extract_strided_slice %12 {offsets = [25, 0, 0], sizes = [1, 2, 256], strides = [1, 1, 1]} : vector<49x2x256xf32> to vector<1x2x256xf32>
    %165 = vector.shape_cast %164 : vector<1x2x256xf32> to vector<2x256xf32>
    %166 = arith.mulf %163, %165 : vector<2x256xf32>
    %167 = arith.addf %162, %166 : vector<2x256xf32>
    %c254_i32 = arith.constant 254 : i32
    %168 = tpu.dynamic_rotate %37 by %c254_i32 dim 1 : vector<2x256xf32>, i32 -> vector<2x256xf32>
    %169 = vector.extract_strided_slice %12 {offsets = [26, 0, 0], sizes = [1, 2, 256], strides = [1, 1, 1]} : vector<49x2x256xf32> to vector<1x2x256xf32>
    %170 = vector.shape_cast %169 : vector<1x2x256xf32> to vector<2x256xf32>
    %171 = arith.mulf %168, %170 : vector<2x256xf32>
    %172 = arith.addf %167, %171 : vector<2x256xf32>
    %c253_i32 = arith.constant 253 : i32
    %173 = tpu.dynamic_rotate %37 by %c253_i32 dim 1 : vector<2x256xf32>, i32 -> vector<2x256xf32>
    %174 = vector.extract_strided_slice %12 {offsets = [27, 0, 0], sizes = [1, 2, 256], strides = [1, 1, 1]} : vector<49x2x256xf32> to vector<1x2x256xf32>
    %175 = vector.shape_cast %174 : vector<1x2x256xf32> to vector<2x256xf32>
    %176 = arith.mulf %173, %175 : vector<2x256xf32>
    %177 = arith.addf %172, %176 : vector<2x256xf32>
    %c243_i32 = arith.constant 243 : i32
    %178 = tpu.dynamic_rotate %37 by %c243_i32 dim 1 : vector<2x256xf32>, i32 -> vector<2x256xf32>
    %179 = vector.extract_strided_slice %12 {offsets = [28, 0, 0], sizes = [1, 2, 256], strides = [1, 1, 1]} : vector<49x2x256xf32> to vector<1x2x256xf32>
    %180 = vector.shape_cast %179 : vector<1x2x256xf32> to vector<2x256xf32>
    %181 = arith.mulf %178, %180 : vector<2x256xf32>
    %182 = arith.addf %177, %181 : vector<2x256xf32>
    %c242_i32 = arith.constant 242 : i32
    %183 = tpu.dynamic_rotate %37 by %c242_i32 dim 1 : vector<2x256xf32>, i32 -> vector<2x256xf32>
    %184 = vector.extract_strided_slice %12 {offsets = [29, 0, 0], sizes = [1, 2, 256], strides = [1, 1, 1]} : vector<49x2x256xf32> to vector<1x2x256xf32>
    %185 = vector.shape_cast %184 : vector<1x2x256xf32> to vector<2x256xf32>
    %186 = arith.mulf %183, %185 : vector<2x256xf32>
    %187 = arith.addf %182, %186 : vector<2x256xf32>
    %c241_i32 = arith.constant 241 : i32
    %188 = tpu.dynamic_rotate %37 by %c241_i32 dim 1 : vector<2x256xf32>, i32 -> vector<2x256xf32>
    %189 = vector.extract_strided_slice %12 {offsets = [30, 0, 0], sizes = [1, 2, 256], strides = [1, 1, 1]} : vector<49x2x256xf32> to vector<1x2x256xf32>
    %190 = vector.shape_cast %189 : vector<1x2x256xf32> to vector<2x256xf32>
    %191 = arith.mulf %188, %190 : vector<2x256xf32>
    %192 = arith.addf %187, %191 : vector<2x256xf32>
    %c240_i32 = arith.constant 240 : i32
    %193 = tpu.dynamic_rotate %37 by %c240_i32 dim 1 : vector<2x256xf32>, i32 -> vector<2x256xf32>
    %194 = vector.extract_strided_slice %12 {offsets = [31, 0, 0], sizes = [1, 2, 256], strides = [1, 1, 1]} : vector<49x2x256xf32> to vector<1x2x256xf32>
    %195 = vector.shape_cast %194 : vector<1x2x256xf32> to vector<2x256xf32>
    %196 = arith.mulf %193, %195 : vector<2x256xf32>
    %197 = arith.addf %192, %196 : vector<2x256xf32>
    %c239_i32 = arith.constant 239 : i32
    %198 = tpu.dynamic_rotate %37 by %c239_i32 dim 1 : vector<2x256xf32>, i32 -> vector<2x256xf32>
    %199 = vector.extract_strided_slice %12 {offsets = [32, 0, 0], sizes = [1, 2, 256], strides = [1, 1, 1]} : vector<49x2x256xf32> to vector<1x2x256xf32>
    %200 = vector.shape_cast %199 : vector<1x2x256xf32> to vector<2x256xf32>
    %201 = arith.mulf %198, %200 : vector<2x256xf32>
    %202 = arith.addf %197, %201 : vector<2x256xf32>
    %c238_i32 = arith.constant 238 : i32
    %203 = tpu.dynamic_rotate %37 by %c238_i32 dim 1 : vector<2x256xf32>, i32 -> vector<2x256xf32>
    %204 = vector.extract_strided_slice %12 {offsets = [33, 0, 0], sizes = [1, 2, 256], strides = [1, 1, 1]} : vector<49x2x256xf32> to vector<1x2x256xf32>
    %205 = vector.shape_cast %204 : vector<1x2x256xf32> to vector<2x256xf32>
    %206 = arith.mulf %203, %205 : vector<2x256xf32>
    %207 = arith.addf %202, %206 : vector<2x256xf32>
    %c237_i32 = arith.constant 237 : i32
    %208 = tpu.dynamic_rotate %37 by %c237_i32 dim 1 : vector<2x256xf32>, i32 -> vector<2x256xf32>
    %209 = vector.extract_strided_slice %12 {offsets = [34, 0, 0], sizes = [1, 2, 256], strides = [1, 1, 1]} : vector<49x2x256xf32> to vector<1x2x256xf32>
    %210 = vector.shape_cast %209 : vector<1x2x256xf32> to vector<2x256xf32>
    %211 = arith.mulf %208, %210 : vector<2x256xf32>
    %212 = arith.addf %207, %211 : vector<2x256xf32>
    %c227_i32 = arith.constant 227 : i32
    %213 = tpu.dynamic_rotate %37 by %c227_i32 dim 1 : vector<2x256xf32>, i32 -> vector<2x256xf32>
    %214 = vector.extract_strided_slice %12 {offsets = [35, 0, 0], sizes = [1, 2, 256], strides = [1, 1, 1]} : vector<49x2x256xf32> to vector<1x2x256xf32>
    %215 = vector.shape_cast %214 : vector<1x2x256xf32> to vector<2x256xf32>
    %216 = arith.mulf %213, %215 : vector<2x256xf32>
    %217 = arith.addf %212, %216 : vector<2x256xf32>
    %c226_i32 = arith.constant 226 : i32
    %218 = tpu.dynamic_rotate %37 by %c226_i32 dim 1 : vector<2x256xf32>, i32 -> vector<2x256xf32>
    %219 = vector.extract_strided_slice %12 {offsets = [36, 0, 0], sizes = [1, 2, 256], strides = [1, 1, 1]} : vector<49x2x256xf32> to vector<1x2x256xf32>
    %220 = vector.shape_cast %219 : vector<1x2x256xf32> to vector<2x256xf32>
    %221 = arith.mulf %218, %220 : vector<2x256xf32>
    %222 = arith.addf %217, %221 : vector<2x256xf32>
    %c225_i32 = arith.constant 225 : i32
    %223 = tpu.dynamic_rotate %37 by %c225_i32 dim 1 : vector<2x256xf32>, i32 -> vector<2x256xf32>
    %224 = vector.extract_strided_slice %12 {offsets = [37, 0, 0], sizes = [1, 2, 256], strides = [1, 1, 1]} : vector<49x2x256xf32> to vector<1x2x256xf32>
    %225 = vector.shape_cast %224 : vector<1x2x256xf32> to vector<2x256xf32>
    %226 = arith.mulf %223, %225 : vector<2x256xf32>
    %227 = arith.addf %222, %226 : vector<2x256xf32>
    %c224_i32 = arith.constant 224 : i32
    %228 = tpu.dynamic_rotate %37 by %c224_i32 dim 1 : vector<2x256xf32>, i32 -> vector<2x256xf32>
    %229 = vector.extract_strided_slice %12 {offsets = [38, 0, 0], sizes = [1, 2, 256], strides = [1, 1, 1]} : vector<49x2x256xf32> to vector<1x2x256xf32>
    %230 = vector.shape_cast %229 : vector<1x2x256xf32> to vector<2x256xf32>
    %231 = arith.mulf %228, %230 : vector<2x256xf32>
    %232 = arith.addf %227, %231 : vector<2x256xf32>
    %c223_i32 = arith.constant 223 : i32
    %233 = tpu.dynamic_rotate %37 by %c223_i32 dim 1 : vector<2x256xf32>, i32 -> vector<2x256xf32>
    %234 = vector.extract_strided_slice %12 {offsets = [39, 0, 0], sizes = [1, 2, 256], strides = [1, 1, 1]} : vector<49x2x256xf32> to vector<1x2x256xf32>
    %235 = vector.shape_cast %234 : vector<1x2x256xf32> to vector<2x256xf32>
    %236 = arith.mulf %233, %235 : vector<2x256xf32>
    %237 = arith.addf %232, %236 : vector<2x256xf32>
    %c222_i32 = arith.constant 222 : i32
    %238 = tpu.dynamic_rotate %37 by %c222_i32 dim 1 : vector<2x256xf32>, i32 -> vector<2x256xf32>
    %239 = vector.extract_strided_slice %12 {offsets = [40, 0, 0], sizes = [1, 2, 256], strides = [1, 1, 1]} : vector<49x2x256xf32> to vector<1x2x256xf32>
    %240 = vector.shape_cast %239 : vector<1x2x256xf32> to vector<2x256xf32>
    %241 = arith.mulf %238, %240 : vector<2x256xf32>
    %242 = arith.addf %237, %241 : vector<2x256xf32>
    %c221_i32 = arith.constant 221 : i32
    %243 = tpu.dynamic_rotate %37 by %c221_i32 dim 1 : vector<2x256xf32>, i32 -> vector<2x256xf32>
    %244 = vector.extract_strided_slice %12 {offsets = [41, 0, 0], sizes = [1, 2, 256], strides = [1, 1, 1]} : vector<49x2x256xf32> to vector<1x2x256xf32>
    %245 = vector.shape_cast %244 : vector<1x2x256xf32> to vector<2x256xf32>
    %246 = arith.mulf %243, %245 : vector<2x256xf32>
    %247 = arith.addf %242, %246 : vector<2x256xf32>
    %c211_i32 = arith.constant 211 : i32
    %248 = tpu.dynamic_rotate %37 by %c211_i32 dim 1 : vector<2x256xf32>, i32 -> vector<2x256xf32>
    %249 = vector.extract_strided_slice %12 {offsets = [42, 0, 0], sizes = [1, 2, 256], strides = [1, 1, 1]} : vector<49x2x256xf32> to vector<1x2x256xf32>
    %250 = vector.shape_cast %249 : vector<1x2x256xf32> to vector<2x256xf32>
    %251 = arith.mulf %248, %250 : vector<2x256xf32>
    %252 = arith.addf %247, %251 : vector<2x256xf32>
    %c210_i32 = arith.constant 210 : i32
    %253 = tpu.dynamic_rotate %37 by %c210_i32 dim 1 : vector<2x256xf32>, i32 -> vector<2x256xf32>
    %254 = vector.extract_strided_slice %12 {offsets = [43, 0, 0], sizes = [1, 2, 256], strides = [1, 1, 1]} : vector<49x2x256xf32> to vector<1x2x256xf32>
    %255 = vector.shape_cast %254 : vector<1x2x256xf32> to vector<2x256xf32>
    %256 = arith.mulf %253, %255 : vector<2x256xf32>
    %257 = arith.addf %252, %256 : vector<2x256xf32>
    %c209_i32 = arith.constant 209 : i32
    %258 = tpu.dynamic_rotate %37 by %c209_i32 dim 1 : vector<2x256xf32>, i32 -> vector<2x256xf32>
    %259 = vector.extract_strided_slice %12 {offsets = [44, 0, 0], sizes = [1, 2, 256], strides = [1, 1, 1]} : vector<49x2x256xf32> to vector<1x2x256xf32>
    %260 = vector.shape_cast %259 : vector<1x2x256xf32> to vector<2x256xf32>
    %261 = arith.mulf %258, %260 : vector<2x256xf32>
    %262 = arith.addf %257, %261 : vector<2x256xf32>
    %c208_i32 = arith.constant 208 : i32
    %263 = tpu.dynamic_rotate %37 by %c208_i32 dim 1 : vector<2x256xf32>, i32 -> vector<2x256xf32>
    %264 = vector.extract_strided_slice %12 {offsets = [45, 0, 0], sizes = [1, 2, 256], strides = [1, 1, 1]} : vector<49x2x256xf32> to vector<1x2x256xf32>
    %265 = vector.shape_cast %264 : vector<1x2x256xf32> to vector<2x256xf32>
    %266 = arith.mulf %263, %265 : vector<2x256xf32>
    %267 = arith.addf %262, %266 : vector<2x256xf32>
    %c207_i32 = arith.constant 207 : i32
    %268 = tpu.dynamic_rotate %37 by %c207_i32 dim 1 : vector<2x256xf32>, i32 -> vector<2x256xf32>
    %269 = vector.extract_strided_slice %12 {offsets = [46, 0, 0], sizes = [1, 2, 256], strides = [1, 1, 1]} : vector<49x2x256xf32> to vector<1x2x256xf32>
    %270 = vector.shape_cast %269 : vector<1x2x256xf32> to vector<2x256xf32>
    %271 = arith.mulf %268, %270 : vector<2x256xf32>
    %272 = arith.addf %267, %271 : vector<2x256xf32>
    %c206_i32 = arith.constant 206 : i32
    %273 = tpu.dynamic_rotate %37 by %c206_i32 dim 1 : vector<2x256xf32>, i32 -> vector<2x256xf32>
    %274 = vector.extract_strided_slice %12 {offsets = [47, 0, 0], sizes = [1, 2, 256], strides = [1, 1, 1]} : vector<49x2x256xf32> to vector<1x2x256xf32>
    %275 = vector.shape_cast %274 : vector<1x2x256xf32> to vector<2x256xf32>
    %276 = arith.mulf %273, %275 : vector<2x256xf32>
    %277 = arith.addf %272, %276 : vector<2x256xf32>
    %c205_i32 = arith.constant 205 : i32
    %278 = tpu.dynamic_rotate %37 by %c205_i32 dim 1 : vector<2x256xf32>, i32 -> vector<2x256xf32>
    %279 = vector.extract_strided_slice %12 {offsets = [48, 0, 0], sizes = [1, 2, 256], strides = [1, 1, 1]} : vector<49x2x256xf32> to vector<1x2x256xf32>
    %280 = vector.shape_cast %279 : vector<1x2x256xf32> to vector<2x256xf32>
    %281 = arith.mulf %278, %280 : vector<2x256xf32>
    %282 = arith.addf %277, %281 : vector<2x256xf32>
    %283 = vector.extract_strided_slice %282 {offsets = [0, 0], sizes = [1, 256], strides = [1, 1]} : vector<2x256xf32> to vector<1x256xf32>
    %284 = vector.extract_strided_slice %282 {offsets = [1, 0], sizes = [1, 256], strides = [1, 1]} : vector<2x256xf32> to vector<1x256xf32>
    %285 = arith.addf %283, %284 : vector<1x256xf32>
    %286 = arith.negf %285 : vector<1x256xf32>
    %287 = math.exp %286 : vector<1x256xf32>
    %cst_22 = arith.constant 1.000000e+00 : f32
    %288 = vector.broadcast %cst_22 : f32 to vector<1x256xf32>
    %289 = arith.addf %288, %287 : vector<1x256xf32>
    %290 = arith.divf %288, %289 : vector<1x256xf32>
    %291 = vector.shape_cast %290 : vector<1x256xf32> to vector<1x1x256xf32>
    %292 = vector.broadcast %291 : vector<1x1x256xf32> to vector<1x4x256xf32>
    %293 = arith.mulf %32, %292 : vector<1x4x256xf32>
    %c0_23 = arith.constant 0 : index
    %c0_24 = arith.constant 0 : index
    %c0_25 = arith.constant 0 : index
    %294 = vector.load %arg6[%c0_23, %c0_24, %c0_25] : memref<1x4x256xf32, #tpu.memory_space<vmem>>, vector<1x4x256xf32>
    tpu.vector_store %arg6[%c0_23, %c0_24, %c0_25], %293 {strides = array<i32>} : memref<1x4x256xf32, #tpu.memory_space<vmem>>, vector<1x4x256xf32>,
    return
  }
  func.func @transform_0(%arg0: i32) -> (i32, i32, i32) {
    %c0_i32 = arith.constant 0 : i32
    %c0_i32_0 = arith.constant 0 : i32
    %c0_i32_1 = arith.constant 0 : i32
    return %arg0, %c0_i32, %c0_i32_0 : i32, i32, i32
  }
  func.func @transform_1(%arg0: i32) -> (i32, i32, i32) {
    %c0_i32 = arith.constant 0 : i32
    %c0_i32_0 = arith.constant 0 : i32
    %c0_i32_1 = arith.constant 0 : i32
    return %arg0, %c0_i32, %c0_i32_0 : i32, i32, i32
  }
  func.func @transform_2(%arg0: i32) -> (i32, i32) {
    %c0_i32 = arith.constant 0 : i32
    %c0_i32_0 = arith.constant 0 : i32
    %c0_i32_1 = arith.constant 0 : i32
    return %c0_i32, %c0_i32_0 : i32, i32
  }
  func.func @transform_3(%arg0: i32) -> (i32, i32) {
    %c0_i32 = arith.constant 0 : i32
    %c0_i32_0 = arith.constant 0 : i32
    %c0_i32_1 = arith.constant 0 : i32
    return %c0_i32, %c0_i32_0 : i32, i32
  }
  func.func @transform_4(%arg0: i32) -> (i32, i32, i32) {
    %c0_i32 = arith.constant 0 : i32
    %c0_i32_0 = arith.constant 0 : i32
    %c0_i32_1 = arith.constant 0 : i32
    %c0_i32_2 = arith.constant 0 : i32
    return %c0_i32, %c0_i32_0, %c0_i32_1 : i32, i32, i32
  }
  func.func @transform_5(%arg0: i32) -> (i32, i32, i32) {
    %c0_i32 = arith.constant 0 : i32
    %c0_i32_0 = arith.constant 0 : i32
    %c0_i32_1 = arith.constant 0 : i32
    return %arg0, %c0_i32, %c0_i32_0 : i32, i32, i32
  }
}

</mosaic_0001>

<bundles_post_ra>
// kernel: mcbam_forward.1
= control target key start
LH: loop header
LB: loop body
LE: loop exit
PB: predicated region body
PF: predicated region fallthrough
CT: control target
= control target key end

     0   :  { %s1862_s18 = smov 0   ;;  %s2669_s0 = inlined_call_operand.vmem [shape: f32[2,4,256], index: 0, kind: input, shape index: {}]   ;;  %s2670_s1 = inlined_call_operand.vmem [shape: f32[2,4,256], index: 1, kind: input, shape index: {}]   ;;  %s2671_s2 = inlined_call_operand.vmem [shape: f32[4,4], index: 2, kind: input, shape index: {}]   ;;  %s2672_s3 = inlined_call_operand.vmem [shape: f32[4,4], index: 3, kind: input, shape index: {}]   ;;  %s2673_s4 = inlined_call_operand.vmem [shape: f32[49,2,256], index: 4, kind: input, shape index: {}]   ;;  %s2674_s5 = inlined_call_operand.vmem [shape: f32[2,4,256], index: 5, kind: output, shape index: {}]  }
   0x1 LB: > { %s1673_s19 = sadd.s32 4294967295, %s1779_s18   ;;  %p1677_p0 = scmp.ge.s32.totalorder %s1779_s18, 1  ;;  %s1779_s18 = sphi %s1862_s18, %s15_s18  }
   0x2   : > { %p197_p1 = scmp.lt.s32.totalorder %s1779_s18, 3 }
   0x4   : > { %p198_p2 = pnand %p1677_p0, %p197_p1 }
   0x5   : > { %p230_p3 = scmp.lt.s32.totalorder (!%p198_p2), %s1673_s19, 1  ;;  %s1784_s6 = smov (!%p198_p2), 50  }
   0x6   : > { %201 = sbr.rel (%p198_p2) target bundleno = 1011 (0x3f3), region = 40  ;;  %s1785_s7 = smov (!%p198_p2), 51  }
   0x7   : > { %s1786_s8 = smov (!%p198_p2), 46   ;;  %s1787_s9 = smov (!%p198_p2), 49  }
   0x8   : > { %s1788_s10 = smov (!%p198_p2), 45   ;;  %s1789_s11 = smov (!%p198_p2), 48  }
   0x9   : > { %s1790_s12 = smov (!%p198_p2), 34   ;;  %s1791_s13 = smov (!%p198_p2), 47  }
   0xa   : > { %s1792_s14 = smov (!%p198_p2), 33   ;;  %s1793_s15 = smov (!%p198_p2), 31  }
   0xb   : > { %s2676_s19 = smov (!%p230_p3, %s1673_s19), 1  ;;  %vm845_vm0 = vcmask 1043456   ;;  %v1781_v13 = vmov 256.0   ;;  %v248_v14 = vld [vmem:[%s2671_s2] sm:$0xf]  ;;  %v870_v21 = vlaneseq  ;;  %vm740_vm2 = vcmask 1040384  }
   0xc   : > { %s1870_s20 = sshll.u32 %s2676_s19, 3  ;;  %1757 = vrcp.f32 %v1781_v13  ;;  %1684 = vmatpush.msk.msra.mxu0 %vm845_vm0, %v248_v14  ;;  %vm878_vm3 = vcmask 31744   ;;  %v249_v29 = vld [vmem:[%s2672_s3] sm:$0xf]  ;;  %v1782_v50 = vmov 839922192  }
   0xd   : > { %s234_s23 = scalar_lea.vmem %s2669_s0, %s1870_s20  ;;  %s239_s26 = scalar_lea.vmem %s2670_s1, %s1870_s20  ;;  %v1892_v23 = vand.u32 127, %v870_v21  ;;  %1686 = vmatpush.msk.msra.mxu1 %vm845_vm0, %v249_v29  ;;  %v957_v32 = vshrl.u32 %v870_v21, 7  ;;  %v964_v51 = vunpack.c.l.s4 %v1782_v50  ;;  %v1783_v56 = vmov 4.0  }
   0xe   : > { %v245_v0 = vld [vmem:[%s234_s23] sm:$0xff]  ;;  %s1794_s16 = smov 35   ;;  %s1795_s17 = smov 30  }
   0xf   : > { %v246_v1 = vld [vmem:[%s239_s26] sm:$0xff]  ;;  %1755 = vset.pattern.permute.xlu1 %v957_v32  ;;  %1756 = vset.pattern.permute.xlu0 %v957_v32  ;;  %v965_v52 = vunpack.c.0.s8 %v964_v51  ;;  %s1796_s19 = smov 19   ;;  %s1797_s21 = smov 32   ;;  %vm1034_vm9 = vcmp.lt.s32.totalorder %v1892_v23, 50  ;;  %vm1023_vm10 = vcmp.lt.s32.totalorder %v1892_v23, 51  ;;  %vm1045_vm11 = vcmp.lt.s32.totalorder %v1892_v23, 49 }
  0x10   : > { %v1880_v2 = vadd.f32 %v246_v1, %v245_v0  ;;  %s1798_s22 = smov 18   ;;  %s1799_s23 = smov 16   ;;  %vm1089_vm12 = vcmp.lt.s32.totalorder %v1892_v23, 45  ;;  %vm1056_vm13 = vcmp.lt.s32.totalorder %v1892_v23, 48  ;;  %vm1067_vm14 = vcmp.lt.s32.totalorder %v1892_v23, 47 }
  0x11   : > { %s1800_s24 = smov 29   ;;  %s1801_s25 = smov 15   ;;  %vm1122_vm15 = vcmp.lt.s32.totalorder %v1892_v23, 33 }
  0x12   : > { %840 = vst [vmem:[#allocation1] ss:$2 sm:$0xff] %v1880_v2  ;;  %v1758_v15 = vpop.eup %1757  ;;  %s1802_s26 = smov 13   ;;  %s1803_s27 = smov 17  }
  0x13   : > { %v852_v16 = vmul.f32 256.0, %v1758_v15  ;;  %vm856_vm1 = vweird.f32 %v1758_v15  ;;  %s1804_s28 = smov 3   ;;  %s1805_s29 = smov 1  }
  0x14   : > { %s1806_s30 = smov 14  }
  0x15   : > { %v853_v17 = vsub.f32 1.0, %v852_v16 }
  0x17   : > { %v854_v18 = vmul.f32 %v1758_v15, %v853_v17 }
  0x19   : > { %v841_v3 = vld.sshfl [vmem:[#allocation1] sm:$0xff pattern:$0x75316420]  ;;  %v842_v4 = vld.sshfl [vmem:[#allocation1 + $0x8] sm:$0xff pattern:$0x75316420]  ;;  %v855_v19 = vadd.f32 %v1758_v15, %v854_v18 }
  0x1a   : > { %v846_v5 = vsel %vm845_vm0, %v841_v3, 0.0  ;;  %v847_v6 = vsel %vm845_vm0, %v842_v4, 0.0  ;;  %859 = vst [vmem:[#allocation1] ss:$2 sm:$0xff] %v1880_v2 }
  0x1b   : > { %v848_v7 = vadd.f32 %v847_v6, %v846_v5  ;;  %v857_v22 = vsel %vm856_vm1, %v1758_v15, %v855_v19  ;;  %vm1078_vm1 = vcmp.lt.s32.totalorder %v1892_v23, 46 }
  0x1d   : > { %849 = vadd.xlane.f32.xlu0 %v848_v7 }
  0x21   : > { %v860_v8 = vld.sshfl [vmem:[#allocation1] sm:$0xff pattern:$0x75316420]  ;;  %v861_v9 = vld.sshfl [vmem:[#allocation1 + $0x8] sm:$0xff pattern:$0x75316420] }
  0x22   : > { %v864_v10 = vsel %vm845_vm0, %v860_v8, -inf  ;;  %v865_v11 = vsel %vm845_vm0, %v861_v9, -inf }
  0x23   : > { %v866_v12 = vmax.f32 %v864_v10, %v865_v11 }
  0x25   : > { %867 = vmax.xlane.f32.xlu0 %v866_v12 }
  0x90   : > { %v850_v20 = vpop.xlane.xlu0 %849 }
  0x91   : > { %v858_v24 = vmul.f32 %v857_v22, %v850_v20 }
  0x93   : > { %v872_v26 = vperm.slane %v858_v24, %v1892_v23 }
  0x98   : > { %v868_v25 = vpop.xlane.xlu0 %867 }
  0x99   : > { %v875_v27 = vperm.slane %v868_v25, %v1892_v23 }
  0x9b   : > { %v877_v28 = vsel %vm740_vm2, %v872_v26, %v875_v27 }
  0x9c   : > { %1685 = vmatmul.msk.f32.vlgmr.msra.gmra.mxu0 %vm878_vm3, %v877_v28 }
 0x119   : > { %v902_v30 = vpop.f32.mrf.mxu0 }
 0x11a   : > { %v905_v31 = vmax.f32 %v902_v30, 0.0 }
 0x11c   : > { %1687 = vmatmul.msk.f32.vlgmr.msra.gmra.mxu1 %vm878_vm3, %v905_v31  ;;  %vm1100_vm3 = vcmp.lt.s32.totalorder %v1892_v23, 35 }
 0x199   : > { %v929_v33 = vpop.f32.mrf.mxu1 }
 0x19a   : > { %v933_v34 = vrot.slane %v929_v33, 1 }
 0x19c   : > { %v935_v35 = vadd.f32 %v933_v34, %v929_v33 }
 0x19e   : > { %v1688_v36 = vmul.f32 -1.442695, %v935_v35 }
 0x1a0   : > { %1759 = vpow2.f32 %v1688_v36 }
 0x1a6   : > { %v1760_v37 = vpop.eup %1759 }
 0x1a7   : > { %v939_v38 = vadd.f32 1.0, %v1760_v37 }
 0x1a9   : > { %1761 = vrcp.f32 %v939_v38  ;;  %v951_v42 = vand.u32 2147483648, %v939_v38  ;;  %v949_v44 = vand.u32 2147483647, %v939_v38  ;;  %vm945_vm5 = vweird.f32 %v939_v38 }
 0x1aa   : > { %1763 = vrcp.f32 %v1783_v56 }
 0x1ab   : > { %v952_v46 = vor.u32 1.1754944e-38, %v951_v42  ;;  %vm950_vm7 = vcmp.eq.f32.partialorder %v949_v44, 8.507059e+37 }
 0x1af   : > { %v1762_v39 = vpop.eup %1761 }
 0x1b0   : > { %v941_v40 = vmul.f32 %v1762_v39, %v939_v38  ;;  %vm946_vm4 = vweird.f32 %v1762_v39  ;;  %v1764_v57 = vpop.eup %1763 }
 0x1b1   : > { %vm947_vm6 = vmor %vm945_vm5, %vm946_vm4  ;;  %v990_v60 = vmul.f32 4.0, %v1764_v57  ;;  %vm994_vm8 = vweird.f32 %v1764_v57  ;;  %vm1155_vm4 = vcmp.lt.s32.totalorder %v1892_v23, 30  ;;  %vm1111_vm5 = vcmp.lt.s32.totalorder %v1892_v23, 34 }
 0x1b2   : > { %v942_v41 = vsub.f32 1.0, %v941_v40  ;;  %v250_v40 = vld [vmem:[%s2673_s4] sm:$0xf] }
 0x1b4   : > { %v943_v43 = vmul.f32 %v1762_v39, %v942_v41 }
 0x1b6   : > { %v944_v45 = vadd.f32 %v1762_v39, %v943_v43 }
 0x1b8   : > { %v948_v47 = vsel %vm947_vm6, %v1762_v39, %v944_v45  ;;  %v251_v39 = vld [vmem:[%s2673_s4 + $0x4] sm:$0xf]  ;;  %v348_v45 = vperm.slane %v250_v40, 0  ;;  %vm1133_vm6 = vcmp.lt.s32.totalorder %v1892_v23, 32 }
 0x1b9   : > { %v953_v48 = vsel %vm950_vm7, %v952_v46, %v948_v47  ;;  %v350_v41 = vperm.slane %v251_v39, 0  ;;  %v351_v42 = vperm.slane %v251_v39, 2  ;;  %v546_v43 = vperm.slane %v251_v39, 1 }
 0x1ba   : > { %v955_v49 = vperm.slane %v953_v48, 0  ;;  %v547_v44 = vperm.slane %v251_v39, 3  ;;  %v349_v46 = vperm.slane %v250_v40, 2  ;;  %v544_v47 = vperm.slane %v250_v40, 1 }
 0x1bb   : > { %v545_v48 = vperm.slane %v250_v40, 3  ;;  %vm1188_vm7 = vcmp.lt.s32.totalorder %v1892_v23, 18 }
 0x1bc   : > { %960 = vperm.xlu1 %1755, %v955_v49   ;;  %v743_v49 = vsel %vm740_vm2, %v350_v41, %v546_v43  ;;  %v744_v50 = vsel %vm740_vm2, %v351_v42, %v547_v44 }
 0x22e   : > { %v961_v53 = vpop.permute.xlu1 %960 }
 0x22f   : > { %v966_v54 = vperm.slane %v961_v53, %v965_v52  ;;  %v741_v53 = vsel %vm740_vm2, %v348_v45, %v544_v47 }
 0x231   : > { %v1902_v55 = vmul.f32 %v966_v54, %v1880_v2  ;;  %v991_v2 = vsub.f32 1.0, %v990_v60  ;;  %v742_v54 = vsel %vm740_vm2, %v349_v46, %v545_v48 }
 0x233   : > { %970 = vst [vmem:[#allocation1] ss:$2 sm:$0xff] %v1902_v55  ;;  %v992_v10 = vmul.f32 %v1764_v57, %v991_v2 }
 0x235   : > { %v993_v19 = vadd.f32 %v1764_v57, %v992_v10 }
 0x237   : > { %v995_v27 = vsel %vm994_vm8, %v1764_v57, %v993_v19  ;;  %vm1144_vm8 = vcmp.lt.s32.totalorder %v1892_v23, 31 }
 0x23a   : > { %v971_v58 = vld.sshfl [vmem:[#allocation1] sm:$0xff pattern:$0x75316420]  ;;  %v972_v59 = vld.sshfl [vmem:[#allocation1 + $0x8] sm:$0xff pattern:$0x75316420] }
 0x23b   : > { %v975_v61 = vsel %vm845_vm0, %v971_v58, 0.0  ;;  %v982_v62 = vsel %vm845_vm0, %v972_v59, 0.0  ;;  %998 = vst [vmem:[#allocation1] ss:$2 sm:$0xff] %v1902_v55  ;;  %v252_v59 = vld [vmem:[%s2673_s4 + $0x8] sm:$0xf] }
 0x23c   : > { %v976_v63 = vrot.slane %v975_v61, 4  ;;  %v983_v0 = vrot.slane %v982_v62, 4  ;;  %v353_v2 = vperm.slane %v252_v59, 2 }
 0x23e   : > { %v977_v1 = vadd.f32 %v976_v63, %v975_v61  ;;  %v984_v3 = vadd.f32 %v983_v0, %v982_v62 }
 0x240   : > { %v978_v4 = vrot.slane %v977_v1, 2  ;;  %v985_v5 = vrot.slane %v984_v3, 2 }
 0x242   : > { %v979_v6 = vadd.f32 %v978_v4, %v977_v1  ;;  %v986_v7 = vadd.f32 %v985_v5, %v984_v3  ;;  %v999_v8 = vld.sshfl [vmem:[#allocation1] sm:$0xff pattern:$0x75316420]  ;;  %v1000_v9 = vld.sshfl [vmem:[#allocation1 + $0x8] sm:$0xff pattern:$0x75316420] }
 0x243   : > { %v1003_v11 = vsel %vm845_vm0, %v999_v8, -inf  ;;  %v1010_v12 = vsel %vm845_vm0, %v1000_v9, -inf  ;;  %v352_v3 = vperm.slane %v252_v59, 0  ;;  %v548_v4 = vperm.slane %v252_v59, 1 }
 0x244   : > { %v1004_v13 = vrot.slane %v1003_v11, 4  ;;  %v1011_v14 = vrot.slane %v1010_v12, 4  ;;  %v980_v15 = vrot.slane %v979_v6, 1  ;;  %v987_v16 = vrot.slane %v986_v7, 1 }
 0x245   : > { %v549_v5 = vperm.slane %v252_v59, 3  ;;  %v745_v10 = vsel %vm740_vm2, %v352_v3, %v548_v4 }
 0x246   : > { %v1005_v17 = vmax.f32 %v1003_v11, %v1004_v13  ;;  %v1012_v18 = vmax.f32 %v1010_v12, %v1011_v14  ;;  %v981_v22 = vadd.f32 %v980_v15, %v979_v6  ;;  %v988_v24 = vadd.f32 %v987_v16, %v986_v7  ;;  %v253_v13 = vld [vmem:[%s2673_s4 + $0xc] sm:$0xf] }
 0x247   : > { %v746_v11 = vsel %vm740_vm2, %v353_v2, %v549_v5  ;;  %v355_v19 = vperm.slane %v253_v13, 2 }
 0x248   : > { %v1006_v20 = vrot.slane %v1005_v17, 2  ;;  %v1013_v21 = vrot.slane %v1012_v18, 2  ;;  %v996_v30 = vmul.f32 %v995_v27, %v981_v22  ;;  %v997_v31 = vmul.f32 %v995_v27, %v988_v24 }
 0x24a   : > { %v1007_v25 = vmax.f32 %v1005_v17, %v1006_v20  ;;  %v1014_v26 = vmax.f32 %v1012_v18, %v1013_v21  ;;  %v354_v18 = vperm.slane %v253_v13, 0  ;;  %v550_v20 = vperm.slane %v253_v13, 1 }
 0x24b   : > { %v551_v21 = vperm.slane %v253_v13, 3 }
 0x24c   : > { %v1008_v28 = vrot.slane %v1007_v25, 1  ;;  %v1015_v29 = vrot.slane %v1014_v26, 1  ;;  %v747_v27 = vsel %vm740_vm2, %v354_v18, %v550_v20 }
 0x24e   : > { %v1009_v32 = vmax.f32 %v1007_v25, %v1008_v28  ;;  %v1016_v33 = vmax.f32 %v1014_v26, %v1015_v29  ;;  %v748_v28 = vsel %vm740_vm2, %v355_v19, %v551_v21 }
 0x250   : > { %v1911_v34 = vsel %vm740_vm2, %v996_v30, %v1009_v32  ;;  %v1914_v35 = vsel %vm740_vm2, %v997_v31, %v1016_v33  ;;  %v254_v32 = vld [vmem:[%s2673_s4 + $0x10] sm:$0xf] }
 0x251   : > { %1032 = vrot.lane.b32.xlu0 %v1914_v35, %s1784_s6  ;;  %1021 = vrot.lane.b32.xlu2 %v1914_v35, %s1785_s7  ;;  %v356_v39 = vperm.slane %v254_v32, 0  ;;  %v357_v40 = vperm.slane %v254_v32, 2  ;;  %v552_v41 = vperm.slane %v254_v32, 1  ;;  %v553_v42 = vperm.slane %v254_v32, 3 }
 0x252   : > { %1019 = vrot.lane.b32.xlu1 %v1911_v34, %s1785_s7  ;;  %s1815_s7 = smov 114  }
 0x253   : > { %v749_v47 = vsel %vm740_vm2, %v356_v39, %v552_v41  ;;  %v750_v48 = vsel %vm740_vm2, %v357_v40, %v553_v42 }
 0x259   : > { %1074 = vrot.lane.b32.xlu0 %v1911_v34, %s1786_s8  ;;  %1030 = vrot.lane.b32.xlu2 %v1911_v34, %s1784_s6  ;;  %s1814_s6 = smov 110  }
 0x25a   : > { %1041 = vrot.lane.b32.xlu1 %v1911_v34, %s1787_s9 }
 0x261   : > { %1087 = vrot.lane.b32.xlu0 %v1914_v35, %s1788_s10  ;;  %1043 = vrot.lane.b32.xlu2 %v1914_v35, %s1787_s9 }
 0x262   : > { %1052 = vrot.lane.b32.xlu1 %v1911_v34, %s1789_s11 }
 0x269   : > { %1107 = vrot.lane.b32.xlu0 %v1911_v34, %s1790_s12  ;;  %1054 = vrot.lane.b32.xlu2 %v1914_v35, %s1789_s11  ;;  %s1824_s11 = smov 96  }
 0x26a   : > { %1063 = vrot.lane.b32.xlu1 %v1911_v34, %s1791_s13 }
 0x271   : > { %1120 = vrot.lane.b32.xlu0 %v1914_v35, %s1792_s14  ;;  %1065 = vrot.lane.b32.xlu2 %v1914_v35, %s1791_s13  ;;  %s1808_s13 = smov 125  }
 0x272   : > { %1076 = vrot.lane.b32.xlu1 %v1914_v35, %s1786_s8 }
 0x279   : > { %1140 = vrot.lane.b32.xlu0 %v1911_v34, %s1793_s15  ;;  %1085 = vrot.lane.b32.xlu2 %v1911_v34, %s1788_s10  ;;  %s1807_s10 = smov 127  }
 0x27a   : > { %1096 = vrot.lane.b32.xlu1 %v1911_v34, %s1794_s16 }
 0x281   : > { %1153 = vrot.lane.b32.xlu0 %v1914_v35, %s1795_s17  ;;  %1098 = vrot.lane.b32.xlu2 %v1914_v35, %s1794_s16  ;;  %s1818_s16 = smov 111  }
 0x282   : > { %1109 = vrot.lane.b32.xlu1 %v1914_v35, %s1790_s12  ;;  %s1816_s12 = smov 109  }
 0x289   : > { %1173 = vrot.lane.b32.xlu0 %v1911_v34, %s1796_s19  ;;  %1118 = vrot.lane.b32.xlu2 %v1911_v34, %s1792_s14  ;;  %s1809_s14 = smov 2  }
 0x28a   : > { %1129 = vrot.lane.b32.xlu1 %v1911_v34, %s1797_s21 }
 0x291   : > { %1186 = vrot.lane.b32.xlu0 %v1914_v35, %s1798_s22  ;;  %1131 = vrot.lane.b32.xlu2 %v1914_v35, %s1797_s21  ;;  %s1826_s21 = smov 80  }
 0x292   : > { %1142 = vrot.lane.b32.xlu1 %v1914_v35, %s1793_s15  ;;  %s1817_s15 = smov 98  }
 0x299   : > { %1206 = vrot.lane.b32.xlu0 %v1911_v34, %s1799_s23  ;;  %1151 = vrot.lane.b32.xlu2 %v1911_v34, %s1795_s17  ;;  %s1810_s17 = smov 115  }
 0x29a   : > { %1162 = vrot.lane.b32.xlu1 %v1911_v34, %s1800_s24 }
 0x2a1   : > { %1219 = vrot.lane.b32.xlu0 %v1914_v35, %s1801_s25  ;;  %1164 = vrot.lane.b32.xlu2 %v1914_v35, %s1800_s24 }
 0x2a2   : > { %1175 = vrot.lane.b32.xlu1 %v1914_v35, %s1796_s19 }
 0x2a9   : > { %1239 = vrot.lane.b32.xlu0 %v1911_v34, %s1802_s26  ;;  %1184 = vrot.lane.b32.xlu2 %v1911_v34, %s1798_s22  ;;  %s1811_s22 = smov 113  }
 0x2aa   : > { %1195 = vrot.lane.b32.xlu1 %v1911_v34, %s1803_s27 }
 0x2ab   : > { %v1022_v36 = vpop.permute.xlu2 %1021 }
 0x2b1   : > { %1252 = vrot.lane.b32.xlu0 %v1914_v35, %s1804_s28  ;;  %1197 = vrot.lane.b32.xlu2 %v1914_v35, %s1803_s27  ;;  %s1821_s27 = smov 99  }
 0x2b2   : > { %1208 = vrot.lane.b32.xlu1 %v1914_v35, %s1799_s23  ;;  %s1812_s23 = smov 126  }
 0x2b3   : > { %v1031_v37 = vpop.permute.xlu2 %1030 }
 0x2b9   : > { %1272 = vrot.lane.b32.xlu0 %v1911_v34, %s1805_s29  ;;  %1217 = vrot.lane.b32.xlu2 %v1911_v34, %s1801_s25 }
 0x2ba   : > { %1228 = vrot.lane.b32.xlu1 %v1911_v34, %s1806_s30 }
 0x2bb   : > { %v1044_v38 = vpop.permute.xlu2 %1043 }
 0x2c1   : > { %1289 = vrot.lane.b32.xlu0 %v1914_v35, %s1807_s10  ;;  %1230 = vrot.lane.b32.xlu2 %v1914_v35, %s1806_s30  ;;  %s1829_s30 = smov 77  }
 0x2c2   : > { %1241 = vrot.lane.b32.xlu1 %v1914_v35, %s1802_s26  ;;  %s1820_s26 = smov 95  }
 0x2c3   : > { %v1033_v51 = vpop.permute.xlu0 %1032  ;;  %v1055_v52 = vpop.permute.xlu2 %1054 }
 0x2c4   : > { %v1035_v56 = vsel %vm1034_vm9, %v1031_v37, %v1033_v51  ;;  %v1036_v57 = vsel %vm1034_vm9, %v1033_v51, %v1031_v37  ;;  %v1020_v58 = vpop.permute.xlu1 %1019  ;;  %v256_v51 = vld [vmem:[%s2673_s4 + $0x18] sm:$0xf]  ;;  %vm1166_vm9 = vcmp.lt.s32.totalorder %v1892_v23, 29 }
 0x2c5   : > { %v1037_v60 = vmul.f32 %v1036_v57, %v743_v49  ;;  %v1038_v61 = vmul.f32 %v1035_v56, %v744_v50  ;;  %v1024_v62 = vsel %vm1023_vm10, %v1020_v58, %v1022_v36  ;;  %v1025_v63 = vsel %vm1023_vm10, %v1022_v36, %v1020_v58  ;;  %v255_v50 = vld [vmem:[%s2673_s4 + $0x14] sm:$0xf] }
 0x2c6   : > { %v1026_v0 = vmul.f32 %v1025_v63, %v741_v53  ;;  %v1027_v1 = vmul.f32 %v1024_v62, %v742_v54  ;;  %v358_v57 = vperm.slane %v255_v50, 0  ;;  %v359_v58 = vperm.slane %v255_v50, 2 }
 0x2c7   : > { %v554_v59 = vperm.slane %v255_v50, 1  ;;  %v557_v3 = vperm.slane %v256_v51, 3  ;;  %vm1221_vm10 = vcmp.lt.s32.totalorder %v1892_v23, 15 }
 0x2c8   : > { %v1039_v6 = vadd.f32 %v1037_v60, %v1026_v0  ;;  %v1040_v7 = vadd.f32 %v1038_v61, %v1027_v1  ;;  %v555_v60 = vperm.slane %v255_v50, 3  ;;  %v360_v61 = vperm.slane %v256_v51, 0 }
 0x2c9   : > { %1309 = vrot.lane.b32.xlu0 %v1911_v34, %s1808_s13  ;;  %1250 = vrot.lane.b32.xlu2 %v1911_v34, %s1804_s28  ;;  %v361_v0 = vperm.slane %v256_v51, 2  ;;  %v556_v1 = vperm.slane %v256_v51, 1  ;;  %s1813_s28 = smov 112   ;;  %v751_v5 = vsel %vm740_vm2, %v358_v57, %v554_v59 }
 0x2ca   : > { %1261 = vrot.lane.b32.xlu1 %v1911_v34, %s1809_s14 }
 0x2cb   : > { %v1987_v8 = vpop.permute.xlu0 %1074  ;;  %v1066_v9 = vpop.permute.xlu2 %1065  ;;  %v754_v13 = vsel %vm740_vm2, %v361_v0, %v557_v3 }
 0x2cc   : > { %v1042_v12 = vpop.permute.xlu1 %1041 }
 0x2cd   : > { %v1046_v14 = vsel %vm1045_vm11, %v1042_v12, %v1044_v38  ;;  %v1047_v15 = vsel %vm1045_vm11, %v1044_v38, %v1042_v12  ;;  %v753_v12 = vsel %vm740_vm2, %v360_v61, %v556_v1  ;;  %vm1177_vm11 = vcmp.lt.s32.totalorder %v1892_v23, 19 }
 0x2ce   : > { %v1048_v16 = vmul.f32 %v1047_v15, %v745_v10  ;;  %v1049_v17 = vmul.f32 %v1046_v14, %v746_v11  ;;  %v257_v11 = vld [vmem:[%s2673_s4 + $0x1c] sm:$0xf] }
 0x2cf   : > { %v362_v18 = vperm.slane %v257_v11, 0  ;;  %v363_v19 = vperm.slane %v257_v11, 2  ;;  %v558_v20 = vperm.slane %v257_v11, 1  ;;  %v559_v21 = vperm.slane %v257_v11, 3 }
 0x2d0   : > { %v1050_v22 = vadd.f32 %v1048_v16, %v1039_v6  ;;  %v1051_v24 = vadd.f32 %v1049_v17, %v1040_v7  ;;  %v752_v6 = vsel %vm740_vm2, %v359_v58, %v555_v60  ;;  %v260_v60 = vld [vmem:[%s2673_s4 + $0x28] sm:$0xf] }
 0x2d1   : > { %1322 = vrot.lane.b32.xlu0 %v1914_v35, %s1810_s17  ;;  %1263 = vrot.lane.b32.xlu2 %v1914_v35, %s1809_s14 }
 0x2d2   : > { %1274 = vrot.lane.b32.xlu1 %v1914_v35, %s1805_s29 }
 0x2d3   : > { %v1088_v25 = vpop.permute.xlu0 %1087  ;;  %v1086_v26 = vpop.permute.xlu2 %1085 }
 0x2d4   : > { %v2003_v29 = vsel %vm1089_vm12, %v1086_v26, %v1088_v25  ;;  %v2005_v30 = vsel %vm1089_vm12, %v1088_v25, %v1086_v26  ;;  %v1053_v31 = vpop.permute.xlu1 %1052  ;;  %vm1199_vm12 = vcmp.lt.s32.totalorder %v1892_v23, 17 }
 0x2d5   : > { %v1057_v33 = vsel %vm1056_vm13, %v1053_v31, %v1055_v52  ;;  %v1058_v36 = vsel %vm1056_vm13, %v1055_v52, %v1053_v31  ;;  %v756_v31 = vsel %vm740_vm2, %v363_v19, %v559_v21  ;;  %v262_v19 = vld [vmem:[%s2673_s4 + $0x30] sm:$0xf]  ;;  %vm1254_vm13 = vcmp.lt.s32.totalorder %v1892_v23, 3 }
 0x2d6   : > { %v1059_v37 = vmul.f32 %v1058_v36, %v747_v27  ;;  %v1060_v38 = vmul.f32 %v1057_v33, %v748_v28  ;;  %v258_v33 = vld [vmem:[%s2673_s4 + $0x20] sm:$0xf]  ;;  %v259_v36 = vld [vmem:[%s2673_s4 + $0x24] sm:$0xf] }
 0x2d7   : > { %v364_v41 = vperm.slane %v258_v33, 0  ;;  %v365_v42 = vperm.slane %v258_v33, 2  ;;  %v367_v50 = vperm.slane %v259_v36, 2  ;;  %v562_v51 = vperm.slane %v259_v36, 1 }
 0x2d8   : > { %v1061_v43 = vadd.f32 %v1059_v37, %v1050_v22  ;;  %v1062_v44 = vadd.f32 %v1060_v38, %v1051_v24  ;;  %v1092_v22 = vmul.f32 %v2005_v30, %v753_v12  ;;  %v1093_v24 = vmul.f32 %v2003_v29, %v754_v13 }
 0x2d9   : > { %1342 = vrot.lane.b32.xlu0 %v1911_v34, %s1811_s22  ;;  %1287 = vrot.lane.b32.xlu2 %v1911_v34, %s1807_s10  ;;  %v755_v29 = vsel %vm740_vm2, %v362_v18, %v558_v20  ;;  %v261_v18 = vld [vmem:[%s2673_s4 + $0x2c] sm:$0xf]  ;;  %s1823_s10 = smov 83  }
 0x2da   : > { %1298 = vrot.lane.b32.xlu1 %v1911_v34, %s1812_s23 }
 0x2db   : > { %v2016_v45 = vpop.permute.xlu0 %1107  ;;  %v2018_v46 = vpop.permute.xlu2 %1098 }
 0x2dc   : > { %v1064_v49 = vpop.permute.xlu1 %1063 }
 0x2dd   : > { %v1068_v52 = vsel %vm1067_vm14, %v1064_v49, %v1066_v9  ;;  %v1069_v53 = vsel %vm1067_vm14, %v1066_v9, %v1064_v49  ;;  %vm1210_vm14 = vcmp.lt.s32.totalorder %v1892_v23, 16 }
 0x2de   : > { %v1070_v54 = vmul.f32 %v1069_v53, %v749_v47  ;;  %v1071_v56 = vmul.f32 %v1068_v52, %v750_v48  ;;  %v366_v47 = vperm.slane %v259_v36, 0  ;;  %v563_v52 = vperm.slane %v259_v36, 3 }
 0x2df   : > { %v568_v36 = vperm.slane %v262_v19, 1 }
 0x2e0   : > { %v1072_v62 = vadd.f32 %v1070_v54, %v1061_v43  ;;  %v1073_v63 = vadd.f32 %v1071_v56, %v1062_v44  ;;  %v560_v43 = vperm.slane %v258_v33, 1  ;;  %v561_v44 = vperm.slane %v258_v33, 3 }
 0x2e1   : > { %1355 = vrot.lane.b32.xlu0 %v1914_v35, %s1813_s28  ;;  %1300 = vrot.lane.b32.xlu2 %v1914_v35, %s1812_s23  ;;  %v759_v61 = vsel %vm740_vm2, %v366_v47, %v562_v51  ;;  %v373_v33 = vperm.slane %v262_v19, 2  ;;  %s1819_s23 = smov 97  }
 0x2e2   : > { %1311 = vrot.lane.b32.xlu1 %v1914_v35, %s1808_s13  ;;  %v757_v54 = vsel %vm740_vm2, %v364_v41, %v560_v43  ;;  %v758_v56 = vsel %vm740_vm2, %v365_v42, %v561_v44  ;;  %v263_v44 = vld [vmem:[%s2673_s4 + $0x34] sm:$0xf] }
 0x2e3   : > { %v1121_v2 = vpop.permute.xlu0 %1120  ;;  %v1119_v4 = vpop.permute.xlu2 %1118 }
 0x2e4   : > { %v2037_v7 = vsel %vm1122_vm15, %v1119_v4, %v1121_v2  ;;  %v2039_v9 = vsel %vm1122_vm15, %v1121_v2, %v1119_v4  ;;  %v1077_v10 = vpop.permute.xlu1 %1076  ;;  %v368_v2 = vperm.slane %v260_v60, 0  ;;  %v369_v4 = vperm.slane %v260_v60, 2 }
 0x2e5   : > { %v1079_v14 = vsel %vm1078_vm1, %v1987_v8, %v1077_v10  ;;  %v1080_v15 = vsel %vm1078_vm1, %v1077_v10, %v1987_v8  ;;  %v1125_v10 = vmul.f32 %v2039_v9, %v759_v61  ;;  %vm1232_vm15 = vcmp.lt.s32.totalorder %v1892_v23, 14 }
 0x2e6   : > { %v1081_v16 = vmul.f32 %v1080_v15, %v751_v5  ;;  %v1082_v17 = vmul.f32 %v1079_v14, %v752_v6  ;;  %v564_v5 = vperm.slane %v260_v60, 1  ;;  %v565_v6 = vperm.slane %v260_v60, 3 }
 0x2e7   : > { %vm1291_vm1 = vcmp.lt.s32.totalorder %v1892_v23, 127 }
 0x2e8   : > { %v1083_v25 = vadd.f32 %v1081_v16, %v1072_v62  ;;  %v1084_v26 = vadd.f32 %v1082_v17, %v1073_v63  ;;  %v760_v62 = vsel %vm740_vm2, %v367_v50, %v563_v52  ;;  %v762_v16 = vsel %vm740_vm2, %v369_v4, %v565_v6  ;;  %v265_v4 = vld [vmem:[%s2673_s4 + $0x3c] sm:$0xf] }
 0x2e9   : > { %1375 = vrot.lane.b32.xlu0 %v1911_v34, %s1814_s6  ;;  %1320 = vrot.lane.b32.xlu2 %v1911_v34, %s1810_s17  ;;  %v1126_v11 = vmul.f32 %v2037_v7, %v760_v62  ;;  %v761_v7 = vsel %vm740_vm2, %v368_v2, %v564_v5  ;;  %v264_v2 = vld [vmem:[%s2673_s4 + $0x38] sm:$0xf] }
 0x2ea   : > { %1331 = vrot.lane.b32.xlu1 %v1911_v34, %s1815_s7  ;;  %v1094_v8 = vadd.f32 %v1092_v22, %v1083_v25  ;;  %v1095_v27 = vadd.f32 %v1093_v24, %v1084_v26  ;;  %v370_v25 = vperm.slane %v261_v18, 0  ;;  %v371_v26 = vperm.slane %v261_v18, 2 }
 0x2eb   : > { %v2056_v28 = vpop.permute.xlu0 %1140  ;;  %v2058_v30 = vpop.permute.xlu2 %1131 }
 0x2ec   : > { %v1097_v32 = vpop.permute.xlu1 %1096 }
 0x2ed   : > { %v1101_v37 = vsel %vm1100_vm3, %v1097_v32, %v2018_v46  ;;  %v1102_v38 = vsel %vm1100_vm3, %v2018_v46, %v1097_v32  ;;  %vm1243_vm3 = vcmp.lt.s32.totalorder %v1892_v23, 13 }
 0x2ee   : > { %v1103_v39 = vmul.f32 %v1102_v38, %v755_v29  ;;  %v1104_v40 = vmul.f32 %v1101_v37, %v756_v31  ;;  %v372_v29 = vperm.slane %v262_v19, 0  ;;  %v569_v37 = vperm.slane %v262_v19, 3 }
 0x2ef   : > { %v574_v19 = vperm.slane %v265_v4, 1 }
 0x2f0   : > { %v1105_v48 = vadd.f32 %v1103_v39, %v1094_v8  ;;  %v1106_v49 = vadd.f32 %v1104_v40, %v1095_v27  ;;  %v566_v8 = vperm.slane %v261_v18, 1  ;;  %v567_v27 = vperm.slane %v261_v18, 3 }
 0x2f1   : > { %1388 = vrot.lane.b32.xlu0 %v1914_v35, %s1816_s12  ;;  %1333 = vrot.lane.b32.xlu2 %v1914_v35, %s1815_s7  ;;  %v765_v47 = vsel %vm740_vm2, %v372_v29, %v568_v36  ;;  %v379_v18 = vperm.slane %v265_v4, 2  ;;  %s1822_s7 = smov 94  }
 0x2f2   : > { %1344 = vrot.lane.b32.xlu1 %v1914_v35, %s1811_s22  ;;  %v763_v39 = vsel %vm740_vm2, %v370_v25, %v566_v8  ;;  %v764_v40 = vsel %vm740_vm2, %v371_v26, %v567_v27  ;;  %v266_v27 = vld [vmem:[%s2673_s4 + $0x40] sm:$0xf]  ;;  %s1827_s22 = smov 93  }
 0x2f3   : > { %v1154_v46 = vpop.permute.xlu0 %1153  ;;  %v1152_v53 = vpop.permute.xlu2 %1151 }
 0x2f4   : > { %v2079_v57 = vsel %vm1155_vm4, %v1152_v53, %v1154_v46  ;;  %v2081_v58 = vsel %vm1155_vm4, %v1154_v46, %v1152_v53  ;;  %v1110_v59 = vpop.permute.xlu1 %1109  ;;  %v374_v46 = vperm.slane %v263_v44, 0  ;;  %v375_v53 = vperm.slane %v263_v44, 2 }
 0x2f5   : > { %v1112_v63 = vsel %vm1111_vm5, %v2016_v45, %v1110_v59  ;;  %v1113_v0 = vsel %vm1111_vm5, %v1110_v59, %v2016_v45  ;;  %v1158_v59 = vmul.f32 %v2081_v58, %v765_v47  ;;  %vm1265_vm4 = vcmp.lt.s32.totalorder %v1892_v23, 2 }
 0x2f6   : > { %v1114_v1 = vmul.f32 %v1113_v0, %v757_v54  ;;  %v1115_v3 = vmul.f32 %v1112_v63, %v758_v56  ;;  %v570_v54 = vperm.slane %v263_v44, 1  ;;  %v571_v56 = vperm.slane %v263_v44, 3 }
 0x2f7   : > { %vm1324_vm5 = vcmp.lt.s32.totalorder %v1892_v23, 115 }
 0x2f8   : > { %v1116_v12 = vadd.f32 %v1114_v1, %v1105_v48  ;;  %v1117_v13 = vadd.f32 %v1115_v3, %v1106_v49  ;;  %v766_v48 = vsel %vm740_vm2, %v373_v33, %v569_v37  ;;  %v768_v1 = vsel %vm740_vm2, %v375_v53, %v571_v56  ;;  %v268_v53 = vld [vmem:[%s2673_s4 + $0x48] sm:$0xf] }
 0x2f9   : > { %1408 = vrot.lane.b32.xlu0 %v1911_v34, %s1817_s15  ;;  %1353 = vrot.lane.b32.xlu2 %v1911_v34, %s1813_s28  ;;  %v1159_v60 = vmul.f32 %v2079_v57, %v766_v48  ;;  %v767_v57 = vsel %vm740_vm2, %v374_v46, %v570_v54  ;;  %v267_v46 = vld [vmem:[%s2673_s4 + $0x44] sm:$0xf] }
 0x2fa   : > { %1364 = vrot.lane.b32.xlu1 %v1911_v34, %s1818_s16  ;;  %v1127_v45 = vadd.f32 %v1125_v10, %v1116_v12  ;;  %v1128_v14 = vadd.f32 %v1126_v11, %v1117_v13  ;;  %v376_v12 = vperm.slane %v264_v2, 0  ;;  %v377_v13 = vperm.slane %v264_v2, 2 }
 0x2fb   : > { %v2098_v15 = vpop.permute.xlu0 %1173  ;;  %v2100_v9 = vpop.permute.xlu2 %1164 }
 0x2fc   : > { %v1130_v17 = vpop.permute.xlu1 %1129 }
 0x2fd   : > { %v1134_v20 = vsel %vm1133_vm6, %v1130_v17, %v2058_v30  ;;  %v1135_v21 = vsel %vm1133_vm6, %v2058_v30, %v1130_v17  ;;  %vm1276_vm6 = vcmp.lt.s32.totalorder %v1892_v23, 1 }
 0x2fe   : > { %v1136_v22 = vmul.f32 %v1135_v21, %v761_v7  ;;  %v1137_v24 = vmul.f32 %v1134_v20, %v762_v16  ;;  %v378_v7 = vperm.slane %v265_v4, 0  ;;  %v575_v20 = vperm.slane %v265_v4, 3 }
 0x2ff   : > { %v580_v4 = vperm.slane %v268_v53, 1 }
 0x300   : > { %v1138_v31 = vadd.f32 %v1136_v22, %v1127_v45  ;;  %v1139_v32 = vadd.f32 %v1137_v24, %v1128_v14  ;;  %v572_v45 = vperm.slane %v264_v2, 1  ;;  %v573_v14 = vperm.slane %v264_v2, 3 }
 0x301   : > { %1421 = vrot.lane.b32.xlu0 %v1914_v35, %s1819_s23  ;;  %1366 = vrot.lane.b32.xlu2 %v1914_v35, %s1818_s16  ;;  %v771_v29 = vsel %vm740_vm2, %v378_v7, %v574_v19  ;;  %v385_v2 = vperm.slane %v268_v53, 2  ;;  %s1825_s16 = smov 82  }
 0x302   : > { %1377 = vrot.lane.b32.xlu1 %v1914_v35, %s1814_s6  ;;  %v769_v22 = vsel %vm740_vm2, %v376_v12, %v572_v45  ;;  %v770_v24 = vsel %vm740_vm2, %v377_v13, %v573_v14  ;;  %v269_v14 = vld [vmem:[%s2673_s4 + $0x4c] sm:$0xf]  ;;  %s1830_s6 = smov 81  }
 0x303   : > { %v1187_v30 = vpop.permute.xlu0 %1186  ;;  %v1185_v38 = vpop.permute.xlu2 %1184 }
 0x304   : > { %v2121_v41 = vsel %vm1188_vm7, %v1185_v38, %v1187_v30  ;;  %v2123_v42 = vsel %vm1188_vm7, %v1187_v30, %v1185_v38  ;;  %v1143_v43 = vpop.permute.xlu1 %1142  ;;  %v380_v30 = vperm.slane %v266_v27, 0  ;;  %v381_v38 = vperm.slane %v266_v27, 2 }
 0x305   : > { %v1145_v49 = vsel %vm1144_vm8, %v2056_v28, %v1143_v43  ;;  %v1146_v50 = vsel %vm1144_vm8, %v1143_v43, %v2056_v28  ;;  %v1191_v43 = vmul.f32 %v2123_v42, %v771_v29  ;;  %vm1302_vm7 = vcmp.lt.s32.totalorder %v1892_v23, 126 }
 0x306   : > { %v1147_v51 = vmul.f32 %v1146_v50, %v763_v39  ;;  %v1148_v52 = vmul.f32 %v1145_v49, %v764_v40  ;;  %v576_v39 = vperm.slane %v266_v27, 1  ;;  %v577_v40 = vperm.slane %v266_v27, 3 }
 0x307   : > { %vm1313_vm8 = vcmp.lt.s32.totalorder %v1892_v23, 125 }
 0x308   : > { %v1149_v61 = vadd.f32 %v1147_v51, %v1138_v31  ;;  %v1150_v62 = vadd.f32 %v1148_v52, %v1139_v32  ;;  %v772_v31 = vsel %vm740_vm2, %v379_v18, %v575_v20  ;;  %v774_v51 = vsel %vm740_vm2, %v381_v38, %v577_v40  ;;  %v271_v38 = vld [vmem:[%s2673_s4 + $0x54] sm:$0xf] }
 0x309   : > { %1441 = vrot.lane.b32.xlu0 %v1911_v34, %s1820_s26  ;;  %1386 = vrot.lane.b32.xlu2 %v1911_v34, %s1816_s12  ;;  %v1192_v44 = vmul.f32 %v2121_v41, %v772_v31  ;;  %v773_v41 = vsel %vm740_vm2, %v380_v30, %v576_v39  ;;  %v270_v30 = vld [vmem:[%s2673_s4 + $0x50] sm:$0xf] }
 0x30a   : > { %1397 = vrot.lane.b32.xlu1 %v1911_v34, %s1821_s27  ;;  %v1160_v28 = vadd.f32 %v1158_v59, %v1149_v61  ;;  %v1161_v63 = vadd.f32 %v1159_v60, %v1150_v62  ;;  %v382_v61 = vperm.slane %v267_v46, 0  ;;  %v383_v62 = vperm.slane %v267_v46, 2 }
 0x30b   : > { %v2140_v0 = vpop.permute.xlu0 %1206  ;;  %v2142_v58 = vpop.permute.xlu2 %1197 }
 0x30c   : > { %v1163_v3 = vpop.permute.xlu1 %1162 }
 0x30d   : > { %v1167_v5 = vsel %vm1166_vm9, %v1163_v3, %v2100_v9  ;;  %v1168_v6 = vsel %vm1166_vm9, %v2100_v9, %v1163_v3  ;;  %vm1335_vm9 = vcmp.lt.s32.totalorder %v1892_v23, 114 }
 0x30e   : > { %v1169_v10 = vmul.f32 %v1168_v6, %v767_v57  ;;  %v1170_v11 = vmul.f32 %v1167_v5, %v768_v1  ;;  %v384_v57 = vperm.slane %v268_v53, 0  ;;  %v581_v5 = vperm.slane %v268_v53, 3 }
 0x30f   : > { %v586_v53 = vperm.slane %v271_v38, 1 }
 0x310   : > { %v1171_v16 = vadd.f32 %v1169_v10, %v1160_v28  ;;  %v1172_v17 = vadd.f32 %v1170_v11, %v1161_v63  ;;  %v578_v28 = vperm.slane %v267_v46, 1  ;;  %v579_v63 = vperm.slane %v267_v46, 3 }
 0x311   : > { %1454 = vrot.lane.b32.xlu0 %v1914_v35, %s1822_s7  ;;  %1399 = vrot.lane.b32.xlu2 %v1914_v35, %s1821_s27  ;;  %v777_v7 = vsel %vm740_vm2, %v384_v57, %v580_v4  ;;  %v391_v46 = vperm.slane %v271_v38, 2  ;;  %s1828_s27 = smov 79  }
 0x312   : > { %1410 = vrot.lane.b32.xlu1 %v1914_v35, %s1817_s15  ;;  %v775_v10 = vsel %vm740_vm2, %v382_v61, %v578_v28  ;;  %v776_v11 = vsel %vm740_vm2, %v383_v62, %v579_v63  ;;  %v272_v63 = vld [vmem:[%s2673_s4 + $0x58] sm:$0xf]  ;;  %s1831_s15 = smov 78  }
 0x313   : > { %v1220_v9 = vpop.permute.xlu0 %1219  ;;  %v1218_v21 = vpop.permute.xlu2 %1217 }
 0x314   : > { %v2163_v25 = vsel %vm1221_vm10, %v1218_v21, %v1220_v9  ;;  %v2165_v26 = vsel %vm1221_vm10, %v1220_v9, %v1218_v21  ;;  %v1176_v8 = vpop.permute.xlu1 %1175  ;;  %v386_v9 = vperm.slane %v269_v14, 0  ;;  %v387_v21 = vperm.slane %v269_v14, 2 }
 0x315   : > { %v1178_v32 = vsel %vm1177_vm11, %v2098_v15, %v1176_v8  ;;  %v1179_v33 = vsel %vm1177_vm11, %v1176_v8, %v2098_v15  ;;  %v1224_v8 = vmul.f32 %v2165_v26, %v777_v7  ;;  %vm1357_vm10 = vcmp.lt.s32.totalorder %v1892_v23, 112 }
 0x316   : > { %v1180_v36 = vmul.f32 %v1179_v33, %v769_v22  ;;  %v1181_v37 = vmul.f32 %v1178_v32, %v770_v24  ;;  %v582_v22 = vperm.slane %v269_v14, 1  ;;  %v583_v24 = vperm.slane %v269_v14, 3 }
 0x317   : > { %vm1390_vm11 = vcmp.lt.s32.totalorder %v1892_v23, 109 }
 0x318   : > { %v1182_v47 = vadd.f32 %v1180_v36, %v1171_v16  ;;  %v1183_v48 = vadd.f32 %v1181_v37, %v1172_v17  ;;  %v778_v16 = vsel %vm740_vm2, %v385_v2, %v581_v5  ;;  %v780_v36 = vsel %vm740_vm2, %v387_v21, %v583_v24  ;;  %v274_v24 = vld [vmem:[%s2673_s4 + $0x60] sm:$0xf] }
 0x319   : > { %1474 = vrot.lane.b32.xlu0 %v1911_v34, %s1823_s10  ;;  %1419 = vrot.lane.b32.xlu2 %v1911_v34, %s1819_s23  ;;  %v1225_v27 = vmul.f32 %v2163_v25, %v778_v16  ;;  %v779_v25 = vsel %vm740_vm2, %v386_v9, %v582_v22  ;;  %v273_v9 = vld [vmem:[%s2673_s4 + $0x5c] sm:$0xf] }
 0x31a   : > { %1430 = vrot.lane.b32.xlu1 %v1911_v34, %s1824_s11  ;;  %v1193_v15 = vadd.f32 %v1191_v43, %v1182_v47  ;;  %v1194_v49 = vadd.f32 %v1192_v44, %v1183_v48  ;;  %v388_v47 = vperm.slane %v270_v30, 0  ;;  %v389_v48 = vperm.slane %v270_v30, 2 }
 0x31b   : > { %v2182_v50 = vpop.permute.xlu0 %1239  ;;  %v2184_v42 = vpop.permute.xlu2 %1230 }
 0x31c   : > { %v1196_v52 = vpop.permute.xlu1 %1195 }
 0x31d   : > { %v1200_v54 = vsel %vm1199_vm12, %v1196_v52, %v2142_v58  ;;  %v1201_v56 = vsel %vm1199_vm12, %v2142_v58, %v1196_v52  ;;  %vm1346_vm12 = vcmp.lt.s32.totalorder %v1892_v23, 113 }
 0x31e   : > { %v1202_v59 = vmul.f32 %v1201_v56, %v773_v41  ;;  %v1203_v60 = vmul.f32 %v1200_v54, %v774_v51  ;;  %v390_v41 = vperm.slane %v271_v38, 0  ;;  %v587_v54 = vperm.slane %v271_v38, 3 }
 0x31f   : > { %v397_v38 = vperm.slane %v274_v24, 2 }
 0x320   : > { %v1204_v1 = vadd.f32 %v1202_v59, %v1193_v15  ;;  %v1205_v3 = vadd.f32 %v1203_v60, %v1194_v49  ;;  %v584_v15 = vperm.slane %v270_v30, 1  ;;  %v585_v49 = vperm.slane %v270_v30, 3 }
 0x321   : > { %1487 = vrot.lane.b32.xlu0 %v1914_v35, %s1825_s16  ;;  %1432 = vrot.lane.b32.xlu2 %v1914_v35, %s1824_s11  ;;  %v783_v57 = vsel %vm740_vm2, %v390_v41, %v586_v53  ;;  %v396_v30 = vperm.slane %v274_v24, 0  ;;  %v276_v53 = vld [vmem:[%s2673_s4 + $0x68] sm:$0xf] }
 0x322   : > { %1443 = vrot.lane.b32.xlu1 %v1914_v35, %s1820_s26  ;;  %v781_v59 = vsel %vm740_vm2, %v388_v47, %v584_v15  ;;  %v782_v60 = vsel %vm740_vm2, %v389_v48, %v585_v49 }
 0x323   : > { %v1253_v58 = vpop.permute.xlu0 %1252  ;;  %v1251_v6 = vpop.permute.xlu2 %1250 }
 0x324   : > { %v2205_v12 = vsel %vm1254_vm13, %v1251_v6, %v1253_v58  ;;  %v2207_v13 = vsel %vm1254_vm13, %v1253_v58, %v1251_v6  ;;  %v1209_v45 = vpop.permute.xlu1 %1208  ;;  %v392_v58 = vperm.slane %v272_v63, 0  ;;  %v393_v6 = vperm.slane %v272_v63, 2 }
 0x325   : > { %v1211_v17 = vsel %vm1210_vm14, %v2140_v0, %v1209_v45  ;;  %v1212_v18 = vsel %vm1210_vm14, %v1209_v45, %v2140_v0  ;;  %v1257_v45 = vmul.f32 %v2207_v13, %v783_v57  ;;  %vm1368_vm13 = vcmp.lt.s32.totalorder %v1892_v23, 111 }
 0x326   : > { %v1213_v19 = vmul.f32 %v1212_v18, %v775_v10  ;;  %v1214_v20 = vmul.f32 %v1211_v17, %v776_v11  ;;  %v588_v10 = vperm.slane %v272_v63, 1  ;;  %v589_v11 = vperm.slane %v272_v63, 3 }
 0x327   : > { %vm1379_vm14 = vcmp.lt.s32.totalorder %v1892_v23, 110 }
 0x328   : > { %v1215_v29 = vadd.f32 %v1213_v19, %v1204_v1  ;;  %v1216_v31 = vadd.f32 %v1214_v20, %v1205_v3  ;;  %v784_v1 = vsel %vm740_vm2, %v391_v46, %v587_v54  ;;  %v786_v19 = vsel %vm740_vm2, %v393_v6, %v589_v11 }
 0x329   : > { %1507 = vrot.lane.b32.xlu0 %v1911_v34, %s1826_s21  ;;  %1452 = vrot.lane.b32.xlu2 %v1911_v34, %s1822_s7  ;;  %v1258_v14 = vmul.f32 %v2205_v12, %v784_v1  ;;  %v785_v12 = vsel %vm740_vm2, %v392_v58, %v588_v10  ;;  %v400_v1 = vperm.slane %v276_v53, 0 }
 0x32a   : > { %1463 = vrot.lane.b32.xlu1 %v1911_v34, %s1827_s22  ;;  %v1226_v0 = vadd.f32 %v1224_v8, %v1215_v29  ;;  %v1227_v32 = vadd.f32 %v1225_v27, %v1216_v31  ;;  %v275_v8 = vld [vmem:[%s2673_s4 + $0x64] sm:$0xf]  ;;  %v394_v31 = vperm.slane %v273_v9, 0 }
 0x32b   : > { %v2224_v33 = vpop.permute.xlu0 %1272  ;;  %v2226_v26 = vpop.permute.xlu2 %1263  ;;  %v595_v47 = vperm.slane %v275_v8, 3 }
 0x32c   : > { %v1229_v37 = vpop.permute.xlu1 %1228 }
 0x32d   : > { %v1233_v39 = vsel %vm1232_vm15, %v1229_v37, %v2184_v42  ;;  %v1234_v40 = vsel %vm1232_vm15, %v2184_v42, %v1229_v37  ;;  %vm1423_vm15 = vcmp.lt.s32.totalorder %v1892_v23, 97 }
 0x32e   : > { %v1235_v43 = vmul.f32 %v1234_v40, %v779_v25  ;;  %v1236_v44 = vmul.f32 %v1233_v39, %v780_v36  ;;  %v591_v25 = vperm.slane %v273_v9, 3  ;;  %v398_v39 = vperm.slane %v275_v8, 0 }
 0x32f   : > { %v593_v40 = vperm.slane %v274_v24, 3 }
 0x330   : > { %v1237_v51 = vadd.f32 %v1235_v43, %v1226_v0  ;;  %v1238_v52 = vadd.f32 %v1236_v44, %v1227_v32  ;;  %v395_v0 = vperm.slane %v273_v9, 2  ;;  %v590_v32 = vperm.slane %v273_v9, 1  ;;  %v278_v9 = vld [vmem:[%s2673_s4 + $0x70] sm:$0xf] }
 0x331   : > { %1520 = vrot.lane.b32.xlu0 %v1914_v35, %s1828_s27  ;;  %1465 = vrot.lane.b32.xlu2 %v1914_v35, %s1827_s22  ;;  %v399_v43 = vperm.slane %v275_v8, 2  ;;  %v594_v44 = vperm.slane %v275_v8, 1 }
 0x332   : > { %1476 = vrot.lane.b32.xlu1 %v1914_v35, %s1823_s10  ;;  %v787_v49 = vsel %vm740_vm2, %v394_v31, %v590_v32  ;;  %v788_v41 = vsel %vm740_vm2, %v395_v0, %v591_v25  ;;  %v404_v32 = vperm.slane %v278_v9, 0  ;;  %v405_v25 = vperm.slane %v278_v9, 2 }
 0x333   : > { %v1290_v42 = vpop.permute.xlu0 %1289  ;;  %v1288_v56 = vpop.permute.xlu2 %1287 }
 0x334   : > { %v2247_v61 = vsel %vm1291_vm1, %v1288_v56, %v1290_v42  ;;  %v2249_v62 = vsel %vm1291_vm1, %v1290_v42, %v1288_v56  ;;  %v1242_v28 = vpop.permute.xlu1 %1241  ;;  %v790_v42 = vsel %vm740_vm2, %v397_v38, %v593_v40  ;;  %vm1401_vm1 = vcmp.lt.s32.totalorder %v1892_v23, 99 }
 0x335   : > { %v1244_v3 = vsel %vm1243_vm3, %v2182_v50, %v1242_v28  ;;  %v1245_v2 = vsel %vm1243_vm3, %v1242_v28, %v2182_v50  ;;  %v792_v28 = vsel %vm740_vm2, %v399_v43, %v595_v47  ;;  %vm1456_vm3 = vcmp.lt.s32.totalorder %v1892_v23, 94 }
 0x336   : > { %v1246_v4 = vmul.f32 %v1245_v2, %v781_v59  ;;  %v1247_v5 = vmul.f32 %v1244_v3, %v782_v60  ;;  %v791_v60 = vsel %vm740_vm2, %v398_v39, %v594_v44  ;;  %v401_v3 = vperm.slane %v276_v53, 2 }
 0x337   : > { %v596_v2 = vperm.slane %v276_v53, 1  ;;  %v1295_v11 = vmul.f32 %v2249_v62, %v792_v28 }
 0x338   : > { %v1248_v7 = vadd.f32 %v1246_v4, %v1237_v51  ;;  %v1249_v16 = vadd.f32 %v1247_v5, %v1238_v52  ;;  %v597_v4 = vperm.slane %v276_v53, 3  ;;  %v1284_v5 = vmul.f32 %v1914_v35, %v790_v42 }
 0x339   : > { %1540 = vrot.lane.b32.xlu0 %v1911_v34, %s1829_s30  ;;  %1485 = vrot.lane.b32.xlu2 %v1911_v34, %s1825_s16  ;;  %s244_s16 = scalar_lea.vmem %s2674_s5, %s1870_s20 }
 0x33a   : > { %1496 = vrot.lane.b32.xlu1 %v1911_v34, %s1830_s6  ;;  %v1259_v50 = vadd.f32 %v1257_v45, %v1248_v7  ;;  %v1260_v17 = vadd.f32 %v1258_v14, %v1249_v16  ;;  %v793_v16 = vsel %vm740_vm2, %v400_v1, %v596_v2 }
 0x33b   : > { %v2266_v18 = vpop.permute.xlu0 %1309  ;;  %v2268_v13 = vpop.permute.xlu2 %1300 }
 0x33c   : > { %v1262_v20 = vpop.permute.xlu1 %1261 }
 0x33d   : > { %v1266_v21 = vsel %vm1265_vm4, %v1262_v20, %v2226_v26  ;;  %v1267_v22 = vsel %vm1265_vm4, %v2226_v26, %v1262_v20  ;;  %v592_v26 = vperm.slane %v274_v24, 1  ;;  %vm1412_vm4 = vcmp.lt.s32.totalorder %v1892_v23, 98 }
 0x33e   : > { %v1268_v27 = vmul.f32 %v1267_v22, %v785_v12  ;;  %v1269_v29 = vmul.f32 %v1266_v21, %v786_v19 }
 0x33f   : > { %v789_v54 = vsel %vm740_vm2, %v396_v30, %v592_v26  ;;  %v279_v26 = vld [vmem:[%s2673_s4 + $0x74] sm:$0xf] }
 0x340   : > { %v1270_v36 = vadd.f32 %v1268_v27, %v1259_v50  ;;  %v1271_v37 = vadd.f32 %v1269_v29, %v1260_v17  ;;  %v1283_v10 = vmul.f32 %v1911_v34, %v789_v54  ;;  %v794_v50 = vsel %vm740_vm2, %v401_v3, %v597_v4 }
 0x341   : > { %1498 = vrot.lane.b32.xlu2 %v1914_v35, %s1830_s6  ;;  %v603_v53 = vperm.slane %v279_v26, 3 }
 0x342   : > { %1509 = vrot.lane.b32.xlu1 %v1914_v35, %s1826_s21 }
 0x343   : > { %v1323_v48 = vpop.permute.xlu0 %1322  ;;  %v1321_v15 = vpop.permute.xlu2 %1320 }
 0x344   : > { %v2290_v51 = vsel %vm1324_vm5, %v1321_v15, %v1323_v48  ;;  %v2292_v52 = vsel %vm1324_vm5, %v1323_v48, %v1321_v15  ;;  %v1275_v46 = vpop.permute.xlu1 %1274  ;;  %vm1434_vm5 = vcmp.lt.s32.totalorder %v1892_v23, 96 }
 0x345   : > { %v1277_v56 = vsel %vm1276_vm6, %v2224_v33, %v1275_v46  ;;  %v1278_v59 = vsel %vm1276_vm6, %v1275_v46, %v2224_v33  ;;  %v1294_v33 = vmul.f32 %v2247_v61, %v791_v60  ;;  %v277_v61 = vld [vmem:[%s2673_s4 + $0x6c] sm:$0xf]  ;;  %v602_v46 = vperm.slane %v279_v26, 1 }
 0x346   : > { %v1279_v63 = vmul.f32 %v1278_v59, %v787_v49  ;;  %v1280_v57 = vmul.f32 %v1277_v56, %v788_v41  ;;  %v402_v24 = vperm.slane %v277_v61, 0  ;;  %v403_v8 = vperm.slane %v277_v61, 2 }
 0x347   : > { %v598_v27 = vperm.slane %v277_v61, 1  ;;  %v599_v29 = vperm.slane %v277_v61, 3  ;;  %v406_v49 = vperm.slane %v279_v26, 0  ;;  %v407_v41 = vperm.slane %v279_v26, 2  ;;  %v284_v61 = vld [vmem:[%s2673_s4 + $0x88] sm:$0xf] }
 0x348   : > { %v1281_v58 = vadd.f32 %v1279_v63, %v1270_v36  ;;  %v1282_v6 = vadd.f32 %v1280_v57, %v1271_v37  ;;  %v600_v36 = vperm.slane %v278_v9, 1  ;;  %v601_v37 = vperm.slane %v278_v9, 3 }
 0x349   : > { %1518 = vrot.lane.b32.xlu2 %v1911_v34, %s1828_s27  ;;  %v795_v30 = vsel %vm740_vm2, %v402_v24, %v598_v27  ;;  %v796_v38 = vsel %vm740_vm2, %v403_v8, %v599_v29  ;;  %v800_v57 = vsel %vm740_vm2, %v407_v41, %v603_v53  ;;  %v416_v8 = vperm.slane %v284_v61, 0 }
 0x34a   : > { %v1285_v45 = vadd.f32 %v1283_v10, %v1281_v58  ;;  %v1286_v14 = vadd.f32 %v1284_v5, %v1282_v6  ;;  %1529 = vrot.lane.b32.xlu1 %v1911_v34, %s1831_s15  ;;  %v797_v40 = vsel %vm740_vm2, %v404_v32, %v600_v36  ;;  %v798_v43 = vsel %vm740_vm2, %v405_v25, %v601_v37 }
 0x34b   : > { %v1334_v7 = vpop.permute.xlu2 %1333  ;;  %v2313_v17 = vpop.permute.xlu0 %1342  ;;  %v1327_v54 = vmul.f32 %v2290_v51, %v797_v40  ;;  %v1328_v42 = vmul.f32 %v2292_v52, %v798_v43  ;;  %v417_v27 = vperm.slane %v284_v61, 2  ;;  %v612_v29 = vperm.slane %v284_v61, 1  ;;  %v287_v40 = vld [vmem:[%s2673_s4 + $0x94] sm:$0xf] }
 0x34c   : > { %v1297_v12 = vadd.f32 %v1295_v11, %v1286_v14  ;;  %v1299_v19 = vpop.permute.xlu1 %1298  ;;  %v1296_v20 = vadd.f32 %v1294_v33, %v1285_v45  ;;  %vm1445_vm6 = vcmp.lt.s32.totalorder %v1892_v23, 95 }
 0x34d   : > { %v1303_v62 = vsel %vm1302_vm7, %v1299_v19, %v2268_v13  ;;  %v1304_v34 = vsel %vm1302_vm7, %v2268_v13, %v1299_v19  ;;  %v809_v26 = vsel %vm740_vm2, %v416_v8, %v612_v29  ;;  %vm1467_vm7 = vcmp.lt.s32.totalorder %v1892_v23, 93 }
 0x34e   : > { %v1305_v21 = vmul.f32 %v1303_v62, %v793_v16  ;;  %v1306_v22 = vmul.f32 %v1304_v34, %v794_v50  ;;  %v280_v34 = vld [vmem:[%s2673_s4 + $0x78] sm:$0xf] }
 0x34f   : > { %v409_v32 = vperm.slane %v280_v34, 2  ;;  %v604_v25 = vperm.slane %v280_v34, 1  ;;  %v605_v36 = vperm.slane %v280_v34, 3 }
 0x350   : > { %v1307_v31 = vadd.f32 %v1305_v21, %v1296_v20  ;;  %v1308_v0 = vadd.f32 %v1306_v22, %v1297_v12  ;;  %v281_v20 = vld [vmem:[%s2673_s4 + $0x7c] sm:$0xf] }
 0x351   : > { %1531 = vrot.lane.b32.xlu2 %v1914_v35, %s1831_s15  ;;  %v410_v9 = vperm.slane %v281_v20, 0  ;;  %v411_v21 = vperm.slane %v281_v20, 2  ;;  %v606_v22 = vperm.slane %v281_v20, 1  ;;  %v607_v24 = vperm.slane %v281_v20, 3 }
 0x352   : > { %1542 = vrot.lane.b32.xlu1 %v1914_v35, %s1829_s30 }
 0x353   : > { %v2331_v13 = vpop.permute.xlu2 %1353  ;;  %v2342_v47 = vpop.permute.xlu0 %1355 }
 0x354   : > { %v1312_v39 = vpop.permute.xlu1 %1311 }
 0x355   : > { %v1314_v44 = vsel %vm1313_vm8, %v2266_v18, %v1312_v39  ;;  %v1315_v35 = vsel %vm1313_vm8, %v1312_v39, %v2266_v18  ;;  %v799_v18 = vsel %vm740_vm2, %v406_v49, %v602_v46  ;;  %v804_v39 = vsel %vm740_vm2, %v411_v21, %v607_v24 }
 0x356   : > { %v1316_v48 = vmul.f32 %v1314_v44, %v795_v30  ;;  %v1317_v15 = vmul.f32 %v1315_v35, %v796_v38  ;;  %v282_v30 = vld [vmem:[%s2673_s4 + $0x80] sm:$0xf]  ;;  %v803_v38 = vsel %vm740_vm2, %v410_v9, %v606_v22  ;;  %v802_v35 = vsel %vm740_vm2, %v409_v32, %v605_v36 }
 0x357   : > { %v412_v41 = vperm.slane %v282_v30, 0  ;;  %v413_v46 = vperm.slane %v282_v30, 2  ;;  %v608_v53 = vperm.slane %v282_v30, 1  ;;  %vm1489_vm8 = vcmp.lt.s32.totalorder %v1892_v23, 82 }
 0x358   : > { %v1318_v56 = vadd.f32 %v1316_v48, %v1307_v31  ;;  %v1319_v59 = vadd.f32 %v1317_v15, %v1308_v0  ;;  %v613_v31 = vperm.slane %v284_v61, 3  ;;  %v408_v0 = vperm.slane %v280_v34, 0  ;;  %v283_v48 = vld [vmem:[%s2673_s4 + $0x84] sm:$0xf] }
 0x359   : > { %v805_v24 = vsel %vm740_vm2, %v412_v41, %v608_v53 }
 0x35a   : > { %v1330_v60 = vadd.f32 %v1328_v42, %v1319_v59  ;;  %v1329_v28 = vadd.f32 %v1327_v54, %v1318_v56  ;;  %v2402_v43 = vsel %vm740_vm2, %v417_v27, %v613_v31  ;;  %v801_v44 = vsel %vm740_vm2, %v408_v0, %v604_v25  ;;  %v285_v42 = vld [vmem:[%s2673_s4 + $0x8c] sm:$0xf]  ;;  %v286_v25 = vld [vmem:[%s2673_s4 + $0x90] sm:$0xf] }
 0x35b   : > { %v2347_v63 = vpop.permute.xlu2 %1366  ;;  %v2351_v51 = vpop.permute.xlu0 %1375  ;;  %v609_v54 = vperm.slane %v282_v30, 3  ;;  %v422_v56 = vperm.slane %v287_v40, 0  ;;  %v423_v59 = vperm.slane %v287_v40, 2  ;;  %v419_v20 = vperm.slane %v285_v42, 2 }
 0x35c   : > { %v1332_v1 = vpop.permute.xlu1 %1331  ;;  %v614_v9 = vperm.slane %v285_v42, 1  ;;  %v615_v21 = vperm.slane %v285_v42, 3 }
 0x35d   : > { %v1336_v3 = vsel %vm1335_vm9, %v1332_v1, %v1334_v7  ;;  %v1337_v2 = vsel %vm1335_vm9, %v1334_v7, %v1332_v1  ;;  %v414_v1 = vperm.slane %v283_v48, 0  ;;  %vm1478_vm9 = vcmp.lt.s32.totalorder %v1892_v23, 83 }
 0x35e   : > { %v1338_v4 = vmul.f32 %v1336_v3, %v799_v18  ;;  %v1339_v5 = vmul.f32 %v1337_v2, %v800_v57  ;;  %v1358_v18 = vsel %vm1357_vm10, %v2331_v13, %v2342_v47  ;;  %v1359_v57 = vsel %vm1357_vm10, %v2342_v47, %v2331_v13 }
 0x35f   : > { %v415_v3 = vperm.slane %v283_v48, 2  ;;  %v610_v2 = vperm.slane %v283_v48, 1  ;;  %v1360_v22 = vmul.f32 %v1358_v18, %v803_v38  ;;  %v806_v13 = vsel %vm740_vm2, %v413_v46, %v609_v54 }
 0x360   : > { %v2353_v52 = vadd.f32 %v1338_v4, %v1329_v28  ;;  %v2355_v58 = vadd.f32 %v1339_v5, %v1330_v60  ;;  %v618_v60 = vperm.slane %v287_v40, 1  ;;  %v619_v28 = vperm.slane %v287_v40, 3 }
 0x361   : > { %v611_v4 = vperm.slane %v283_v48, 3  ;;  %v418_v5 = vperm.slane %v285_v42, 0  ;;  %v1361_v8 = vmul.f32 %v1359_v57, %v804_v39  ;;  %v807_v0 = vsel %vm740_vm2, %v414_v1, %v610_v2 }
 0x362   : > { %v2437_v27 = vsel %vm740_vm2, %v422_v56, %v618_v60  ;;  %v2440_v29 = vsel %vm740_vm2, %v423_v59, %v619_v28  ;;  %v812_v39 = vsel %vm740_vm2, %v419_v20, %v615_v21  ;;  %v420_v42 = vperm.slane %v286_v25, 0  ;;  %v288_v56 = vld [vmem:[%s2673_s4 + $0x98] sm:$0xf] }
 0x363   : > { %v2357_v6 = vpop.permute.xlu2 %1386  ;;  %v2359_v33 = vpop.permute.xlu0 %1388  ;;  %v808_v32 = vsel %vm740_vm2, %v415_v3, %v611_v4  ;;  %v811_v38 = vsel %vm740_vm2, %v418_v5, %v614_v9  ;;  %v617_v18 = vperm.slane %v286_v25, 3  ;;  %v620_v3 = vperm.slane %v288_v56, 1 }
 0x364   : > { %v1345_v10 = vpop.permute.xlu1 %1344  ;;  %v1391_v30 = vsel %vm1390_vm11, %v2357_v6, %v2359_v33  ;;  %v1392_v46 = vsel %vm1390_vm11, %v2359_v33, %v2357_v6  ;;  %v421_v33 = vperm.slane %v286_v25, 2  ;;  %v425_v2 = vperm.slane %v288_v56, 2 }
 0x365   : > { %v1347_v61 = vsel %vm1346_vm12, %v2313_v17, %v1345_v10  ;;  %v1348_v34 = vsel %vm1346_vm12, %v1345_v10, %v2313_v17  ;;  %v290_v17 = vld [vmem:[%s2673_s4 + $0xa0] sm:$0xf]  ;;  %v1393_v59 = vmul.f32 %v1391_v30, %v809_v26  ;;  %v424_v26 = vperm.slane %v288_v56, 0 }
 0x366   : > { %v1349_v10 = vmul.f32 %v1347_v61, %v801_v44  ;;  %v1350_v31 = vmul.f32 %v1348_v34, %v802_v35  ;;  %v428_v40 = vperm.slane %v290_v17, 0  ;;  %v429_v44 = vperm.slane %v290_v17, 2 }
 0x367   : > { %v624_v35 = vperm.slane %v290_v17, 1  ;;  %v625_v48 = vperm.slane %v290_v17, 3  ;;  %v621_v4 = vperm.slane %v288_v56, 3  ;;  %v814_v21 = vsel %vm740_vm2, %v421_v33, %v617_v18 }
 0x368   : > { %v1351_v60 = vadd.f32 %v1349_v10, %v2353_v52  ;;  %v1352_v6 = vadd.f32 %v1350_v31, %v2355_v58  ;;  %v1394_v52 = vmul.f32 %v1392_v46, %v2402_v43  ;;  %vm1500_vm10 = vcmp.lt.s32.totalorder %v1892_v23, 81 }
 0x369   : > { %v2490_v58 = vsel %vm740_vm2, %v428_v40, %v624_v35  ;;  %vm1511_vm11 = vcmp.lt.s32.totalorder %v1892_v23, 80  ;;  %vm1522_vm12 = vcmp.lt.s32.totalorder %v1892_v23, 79 }
 0x36a   : > { %v1363_v5 = vadd.f32 %v1361_v8, %v1352_v6  ;;  %v1362_v20 = vadd.f32 %v1360_v22, %v1351_v60  ;;  %v289_v22 = vld [vmem:[%s2673_s4 + $0x9c] sm:$0xf]  ;;  %v817_v8 = vsel %vm740_vm2, %v424_v26, %v620_v3 }
 0x36b   : > { %v2363_v45 = vpop.permute.xlu2 %1399  ;;  %v2365_v14 = vpop.permute.xlu0 %1408  ;;  %v427_v35 = vperm.slane %v289_v22, 2  ;;  %v623_v46 = vperm.slane %v289_v22, 3 }
 0x36c   : > { %v2361_v11 = vpop.permute.xlu1 %1364 }
 0x36d   : > { %v1369_v53 = vsel %vm1368_vm13, %v2361_v11, %v2347_v63  ;;  %v1370_v54 = vsel %vm1368_vm13, %v2347_v63, %v2361_v11  ;;  %v616_v11 = vperm.slane %v286_v25, 1  ;;  %vm1533_vm13 = vcmp.lt.s32.totalorder %v1892_v23, 78 }
 0x36e   : > { %v1371_v57 = vmul.f32 %v1369_v53, %v805_v24  ;;  %v1372_v1 = vmul.f32 %v1370_v54, %v806_v13 }
 0x36f   : > { %v813_v43 = vsel %vm740_vm2, %v420_v42, %v616_v11 }
 0x370   : > { %v1373_v24 = vadd.f32 %v1371_v57, %v1362_v20  ;;  %v1374_v13 = vadd.f32 %v1372_v1, %v1363_v5 }
 0x373   : > { %v2369_v16 = vpop.permute.xlu2 %1419  ;;  %v2373_v12 = vpop.permute.xlu0 %1421 }
 0x374   : > { %v2367_v7 = vpop.permute.xlu1 %1377  ;;  %v1424_v17 = vsel %vm1423_vm15, %v2369_v16, %v2373_v12  ;;  %v1425_v53 = vsel %vm1423_vm15, %v2373_v12, %v2369_v16  ;;  %v820_v12 = vsel %vm740_vm2, %v427_v35, %v623_v46 }
 0x375   : > { %v1380_v28 = vsel %vm1379_vm14, %v2351_v51, %v2367_v7  ;;  %v1381_v63 = vsel %vm1379_vm14, %v2367_v7, %v2351_v51  ;;  %v2497_v7 = vsel %vm740_vm2, %v429_v44, %v625_v48  ;;  %v426_v44 = vperm.slane %v289_v22, 0 }
 0x376   : > { %v1382_v61 = vmul.f32 %v1380_v28, %v807_v0  ;;  %v1383_v34 = vmul.f32 %v1381_v63, %v808_v32  ;;  %v818_v0 = vsel %vm740_vm2, %v425_v2, %v621_v4  ;;  %v293_v32 = vld [vmem:[%s2673_s4 + $0xac] sm:$0xf]  ;;  %v1426_v60 = vmul.f32 %v1424_v17, %v2437_v27  ;;  %v291_v63 = vld [vmem:[%s2673_s4 + $0xa4] sm:$0xf] }
 0x377   : > { %v434_v56 = vperm.slane %v293_v32, 0  ;;  %v435_v6 = vperm.slane %v293_v32, 2  ;;  %v630_v33 = vperm.slane %v293_v32, 1  ;;  %v631_v28 = vperm.slane %v293_v32, 3 }
 0x378   : > { %v1384_v25 = vadd.f32 %v1382_v61, %v1373_v24  ;;  %v1385_v30 = vadd.f32 %v1383_v34, %v1374_v13  ;;  %v1427_v1 = vmul.f32 %v1425_v53, %v2440_v29  ;;  %v430_v26 = vperm.slane %v291_v63, 0  ;;  %v295_v53 = vld [vmem:[%s2673_s4 + $0xb4] sm:$0xf] }
 0x379   : > { %v431_v3 = vperm.slane %v291_v63, 2  ;;  %v626_v2 = vperm.slane %v291_v63, 1  ;;  %v627_v4 = vperm.slane %v291_v63, 3  ;;  %vm1544_vm14 = vcmp.lt.s32.totalorder %v1892_v23, 77 }
 0x37b   : > { %v2375_v19 = vpop.permute.xlu2 %1432  ;;  %v2388_v37 = vpop.permute.xlu0 %1441  ;;  %v824_v35 = vsel %vm740_vm2, %v431_v3, %v627_v4 }
 0x37c   : > { %v2371_v50 = vpop.permute.xlu1 %1397 }
 0x37d   : > { %v1402_v10 = vsel %vm1401_vm1, %v2371_v50, %v2363_v45  ;;  %v1403_v31 = vsel %vm1401_vm1, %v2363_v45, %v2371_v50  ;;  %v622_v50 = vperm.slane %v289_v22, 1 }
 0x37e   : > { %v1404_v54 = vmul.f32 %v1402_v10, %v811_v38  ;;  %v1405_v42 = vmul.f32 %v1403_v31, %v812_v39  ;;  %v2581_v10 = vsel %vm740_vm2, %v435_v6, %v631_v28  ;;  %v823_v31 = vsel %vm740_vm2, %v430_v26, %v626_v2 }
 0x37f   : > { %v819_v16 = vsel %vm740_vm2, %v426_v44, %v622_v50 }
 0x383   : > { %v2410_v15 = vpop.permute.xlu2 %1452  ;;  %v2434_v47 = vpop.permute.xlu0 %1454 }
 0x384   : > { %v2383_v62 = vpop.permute.xlu1 %1410  ;;  %v1457_v5 = vsel %vm1456_vm3, %v2410_v15, %v2434_v47  ;;  %v1458_v20 = vsel %vm1456_vm3, %v2434_v47, %v2410_v15  ;;  %v2578_v47 = vsel %vm740_vm2, %v434_v56, %v630_v33  ;;  %v296_v33 = vld [vmem:[%s2673_s4 + $0xb8] sm:$0xf] }
 0x385   : > { %v1413_v48 = vsel %vm1412_vm4, %v2365_v14, %v2383_v62  ;;  %v1414_v45 = vsel %vm1412_vm4, %v2383_v62, %v2365_v14  ;;  %v1396_v14 = vadd.f32 %v1394_v52, %v1385_v30  ;;  %v1395_v62 = vadd.f32 %v1393_v59, %v1384_v25  ;;  %v292_v59 = vld [vmem:[%s2673_s4 + $0xa8] sm:$0xf] }
 0x386   : > { %v1415_v11 = vmul.f32 %v1413_v48, %v813_v43  ;;  %v1416_v18 = vmul.f32 %v1414_v45, %v814_v21  ;;  %v433_v21 = vperm.slane %v292_v59, 2  ;;  %v628_v17 = vperm.slane %v292_v59, 1 }
 0x387   : > { %v1406_v27 = vadd.f32 %v1404_v54, %v1395_v62  ;;  %v1407_v38 = vadd.f32 %v1405_v42, %v1396_v14  ;;  %v629_v15 = vperm.slane %v292_v59, 3  ;;  %v1459_v30 = vmul.f32 %v1457_v5, %v2490_v58  ;;  %v297_v5 = vld [vmem:[%s2673_s4 + $0xbc] sm:$0xf] }
 0x388   : > { %v1460_v44 = vmul.f32 %v1458_v20, %v2497_v7  ;;  %v637_v4 = vperm.slane %v296_v33, 3 }
 0x389   : > { %v1417_v61 = vadd.f32 %v1415_v11, %v1406_v27  ;;  %v1418_v34 = vadd.f32 %v1416_v18, %v1407_v38  ;;  %v826_v46 = vsel %vm740_vm2, %v433_v21, %v629_v15  ;;  %v441_v27 = vperm.slane %v296_v33, 2 }
 0x38a   : > { %v636_v38 = vperm.slane %v296_v33, 1  ;;  %v442_v15 = vperm.slane %v297_v5, 0 }
 0x38b   : > { %v2461_v41 = vpop.permute.xlu2 %1465  ;;  %v2492_v9 = vpop.permute.xlu0 %1474  ;;  %v1429_v32 = vadd.f32 %v1427_v1, %v1418_v34  ;;  %v634_v1 = vperm.slane %v295_v53, 1 }
 0x38c   : > { %v2412_v49 = vpop.permute.xlu1 %1430 }
 0x38d   : > { %v1435_v29 = vsel %vm1434_vm5, %v2412_v49, %v2375_v19  ;;  %v1436_v52 = vsel %vm1434_vm5, %v2375_v19, %v2412_v49  ;;  %v432_v49 = vperm.slane %v292_v59, 0 }
 0x38e   : > { %v1437_v22 = vmul.f32 %v1435_v29, %v817_v8  ;;  %v1438_v24 = vmul.f32 %v1436_v52, %v818_v0  ;;  %v294_v0 = vld [vmem:[%s2673_s4 + $0xb0] sm:$0xf] }
 0x38f   : > { %v825_v50 = vsel %vm740_vm2, %v432_v49, %v628_v17  ;;  %v436_v54 = vperm.slane %v294_v0, 0  ;;  %v437_v42 = vperm.slane %v294_v0, 2  ;;  %v632_v28 = vperm.slane %v294_v0, 1 }
 0x390   : > { %v1440_v45 = vadd.f32 %v1438_v24, %v1429_v32  ;;  %v633_v63 = vperm.slane %v294_v0, 3 }
 0x393   : > { %v2524_v40 = vpop.permute.xlu2 %1485  ;;  %v2546_v39 = vpop.permute.xlu0 %1487 }
 0x394   : > { %v2452_v36 = vpop.permute.xlu1 %1443  ;;  %v1491_v49 = vsel %vm1489_vm8, %v2546_v39, %v2524_v40 }
 0x395   : > { %v1446_v43 = vsel %vm1445_vm6, %v2388_v37, %v2452_v36  ;;  %v1447_v19 = vsel %vm1445_vm6, %v2452_v36, %v2388_v37  ;;  %v1428_v37 = vadd.f32 %v1426_v60, %v1417_v61 }
 0x396   : > { %v1448_v36 = vmul.f32 %v1446_v43, %v819_v16  ;;  %v1449_v8 = vmul.f32 %v1447_v19, %v820_v12  ;;  %v635_v16 = vperm.slane %v295_v53, 3  ;;  %v440_v12 = vperm.slane %v296_v33, 0 }
 0x397   : > { %v1439_v48 = vadd.f32 %v1437_v22, %v1428_v37  ;;  %v1490_v19 = vsel %vm1489_vm8, %v2524_v40, %v2546_v39  ;;  %v1493_v40 = vmul.f32 %v1491_v49, %v2581_v10 }
 0x398   : > { %v1451_v60 = vadd.f32 %v1449_v8, %v1440_v45  ;;  %v639_v8 = vperm.slane %v297_v5, 3  ;;  %v1492_v0 = vmul.f32 %v1490_v19, %v2578_v47 }
 0x399   : > { %v1450_v56 = vadd.f32 %v1448_v36, %v1439_v48  ;;  %v638_v36 = vperm.slane %v297_v5, 1 }
 0x39a   : > { %v1462_v26 = vadd.f32 %v1460_v44, %v1451_v60 }
 0x39b   : > { %v2575_v13 = vpop.permute.xlu2 %1498  ;;  %v1508_v6 = vpop.permute.xlu0 %1507  ;;  %v1461_v3 = vadd.f32 %v1459_v30, %v1450_v56 }
 0x39c   : > { %v2494_v51 = vpop.permute.xlu1 %1463 }
 0x39d   : > { %v1468_v58 = vsel %vm1467_vm7, %v2494_v51, %v2461_v41  ;;  %v1469_v7 = vsel %vm1467_vm7, %v2461_v41, %v2494_v51  ;;  %v438_v41 = vperm.slane %v295_v53, 0  ;;  %v439_v51 = vperm.slane %v295_v53, 2 }
 0x39e   : > { %v1470_v11 = vmul.f32 %v1468_v58, %v823_v31  ;;  %v1471_v18 = vmul.f32 %v1469_v7, %v824_v35  ;;  %v443_v31 = vperm.slane %v297_v5, 2  ;;  %v298_v35 = vld [vmem:[%s2673_s4 + $0xc0] sm:$0xf] }
 0x39f   : > { %v831_v34 = vsel %vm740_vm2, %v438_v41, %v634_v1  ;;  %v832_v43 = vsel %vm740_vm2, %v439_v51, %v635_v16  ;;  %v444_v58 = vperm.slane %v298_v35, 0  ;;  %v445_v7 = vperm.slane %v298_v35, 2 }
 0x3a0   : > { %v1472_v20 = vadd.f32 %v1470_v11, %v1461_v3  ;;  %v1473_v61 = vadd.f32 %v1471_v18, %v1462_v26  ;;  %v836_v53 = vsel %vm740_vm2, %v443_v31, %v639_v8  ;;  %v640_v60 = vperm.slane %v298_v35, 1 }
 0x3a2   : > { %v837_v16 = vsel %vm740_vm2, %v444_v58, %v640_v60 }
 0x3a3   : > { %v1519_v59 = vpop.permute.xlu2 %1518  ;;  %v1521_v39 = vpop.permute.xlu0 %1520 }
 0x3a4   : > { %v1477_v57 = vpop.permute.xlu1 %1476  ;;  %v1523_v33 = vsel %vm1522_vm12, %v1519_v59, %v1521_v39 }
 0x3a5   : > { %v1479_v14 = vsel %vm1478_vm9, %v2492_v9, %v1477_v57  ;;  %v1480_v62 = vsel %vm1478_vm9, %v1477_v57, %v2492_v9  ;;  %v829_v9 = vsel %vm740_vm2, %v436_v54, %v632_v28  ;;  %v830_v57 = vsel %vm740_vm2, %v437_v42, %v633_v63 }
 0x3a6   : > { %v1481_v29 = vmul.f32 %v1479_v14, %v825_v50  ;;  %v1482_v52 = vmul.f32 %v1480_v62, %v826_v46  ;;  %v835_v46 = vsel %vm740_vm2, %v442_v15, %v638_v36  ;;  %v1524_v28 = vsel %vm1522_vm12, %v1521_v39, %v1519_v59 }
 0x3a8   : > { %v1483_v24 = vadd.f32 %v1481_v29, %v1472_v20  ;;  %v1484_v17 = vadd.f32 %v1482_v52, %v1473_v61 }
 0x3aa   : > { %v1495_v48 = vadd.f32 %v1493_v40, %v1484_v17  ;;  %v1494_v45 = vadd.f32 %v1492_v0, %v1483_v24 }
 0x3ab   : > { %v1532_v54 = vpop.permute.xlu2 %1531 }
 0x3ac   : > { %v1497_v25 = vpop.permute.xlu1 %1496 }
 0x3ad   : > { %v1501_v21 = vsel %vm1500_vm10, %v1497_v25, %v2575_v13  ;;  %v1502_v22 = vsel %vm1500_vm10, %v2575_v13, %v1497_v25  ;;  %v833_v13 = vsel %vm740_vm2, %v440_v12, %v636_v38  ;;  %v834_v25 = vsel %vm740_vm2, %v441_v27, %v637_v4  ;;  %v1541_v27 = vpop.permute.xlu0 %1540 }
 0x3ae   : > { %v1503_v30 = vmul.f32 %v1501_v21, %v829_v9  ;;  %v1504_v44 = vmul.f32 %v1502_v22, %v830_v57  ;;  %v1525_v51 = vmul.f32 %v1523_v33, %v833_v13  ;;  %v1526_v11 = vmul.f32 %v1524_v28, %v834_v25 }
 0x3b0   : > { %v1505_v42 = vadd.f32 %v1503_v30, %v1494_v45  ;;  %v1506_v56 = vadd.f32 %v1504_v44, %v1495_v48 }
 0x3b4   : > { %v1510_v2 = vpop.permute.xlu1 %1509 }
 0x3b5   : > { %v1512_v32 = vsel %vm1511_vm11, %v1508_v6, %v1510_v2  ;;  %v1513_v37 = vsel %vm1511_vm11, %v1510_v2, %v1508_v6  ;;  %v641_v6 = vperm.slane %v298_v35, 3 }
 0x3b6   : > { %v1514_v47 = vmul.f32 %v1512_v32, %v831_v34  ;;  %v1515_v50 = vmul.f32 %v1513_v37, %v832_v43 }
 0x3b7   : > { %v838_v12 = vsel %vm740_vm2, %v445_v7, %v641_v6 }
 0x3b8   : > { %v1516_v62 = vadd.f32 %v1514_v47, %v1505_v42  ;;  %v1517_v41 = vadd.f32 %v1515_v50, %v1506_v56 }
 0x3ba   : > { %v1528_v38 = vadd.f32 %v1526_v11, %v1517_v41  ;;  %v1527_v26 = vadd.f32 %v1525_v51, %v1516_v62 }
 0x3bc   : > { %v1530_v10 = vpop.permute.xlu1 %1529 }
 0x3bd   : > { %v1534_v63 = vsel %vm1533_vm13, %v1530_v10, %v1532_v54  ;;  %v1535_v14 = vsel %vm1533_vm13, %v1532_v54, %v1530_v10 }
 0x3be   : > { %v1536_v18 = vmul.f32 %v1534_v63, %v835_v46  ;;  %v1537_v1 = vmul.f32 %v1535_v14, %v836_v53 }
 0x3c0   : > { %v1538_v52 = vadd.f32 %v1536_v18, %v1527_v26  ;;  %v1539_v2 = vadd.f32 %v1537_v1, %v1528_v38 }
 0x3c4   : > { %v1543_v3 = vpop.permute.xlu1 %1542 }
 0x3c5   : > { %v1545_v59 = vsel %vm1544_vm14, %v1541_v27, %v1543_v3  ;;  %v1546_v29 = vsel %vm1544_vm14, %v1543_v3, %v1541_v27 }
 0x3c6   : > { %v1547_v4 = vmul.f32 %v1545_v59, %v837_v16  ;;  %v1548_v9 = vmul.f32 %v1546_v29, %v838_v12 }
 0x3c8   : > { %v1549_v57 = vadd.f32 %v1547_v4, %v1538_v52  ;;  %v1550_v23 = vadd.f32 %v1548_v9, %v1539_v2 }
 0x3ca   : > { %v1553_v5 = vrot.slane %v1549_v57, 1  ;;  %v1554_v20 = vrot.slane %v1550_v23, 1 }
 0x3cc   : > { %v1557_v61 = vadd.f32 %v1553_v5, %v1549_v57  ;;  %v1558_v34 = vadd.f32 %v1554_v20, %v1550_v23 }
 0x3ce   : > { %v1689_v43 = vmul.f32 -1.442695, %v1557_v61  ;;  %v1690_v19 = vmul.f32 -1.442695, %v1558_v34 }
 0x3d0   : > { %1765 = vpow2.f32 %v1689_v43 }
 0x3d1   : > { %1767 = vpow2.f32 %v1690_v19 }
 0x3d6   : > { %v1766_v49 = vpop.eup %1765 }
 0x3d7   : > { %v1768_v21 = vpop.eup %1767  ;;  %v1565_v22 = vadd.f32 1.0, %v1766_v49 }
 0x3d8   : > { %v1566_v24 = vadd.f32 1.0, %v1768_v21 }
 0x3d9   : > { %1769 = vrcp.f32 %v1565_v22  ;;  %v1578_v0 = vand.u32 2147483648, %v1565_v22  ;;  %v1576_v39 = vand.u32 2147483647, %v1565_v22  ;;  %vm1572_vm1 = vweird.f32 %v1565_v22 }
 0x3da   : > { %1771 = vrcp.f32 %v1566_v24  ;;  %v1593_v40 = vand.u32 2147483648, %v1566_v24  ;;  %v1591_v44 = vand.u32 2147483647, %v1566_v24  ;;  %vm1587_vm4 = vweird.f32 %v1566_v24 }
 0x3db   : > { %v1579_v48 = vor.u32 1.1754944e-38, %v1578_v0  ;;  %vm1577_vm6 = vcmp.eq.f32.partialorder %v1576_v39, 8.507059e+37 }
 0x3dc   : > { %v1594_v45 = vor.u32 1.1754944e-38, %v1593_v40  ;;  %vm1592_vm7 = vcmp.eq.f32.partialorder %v1591_v44, 8.507059e+37 }
 0x3df   : > { %v1770_v17 = vpop.eup %1769 }
 0x3e0   : > { %v1772_v15 = vpop.eup %1771  ;;  %v1568_v31 = vmul.f32 %v1770_v17, %v1565_v22  ;;  %vm1573_vm2 = vweird.f32 %v1770_v17 }
 0x3e1   : > { %v1583_v32 = vmul.f32 %v1772_v15, %v1566_v24  ;;  %vm1588_vm15 = vweird.f32 %v1772_v15  ;;  %vm1574_vm3 = vmor %vm1572_vm1, %vm1573_vm2 }
 0x3e2   : > { %v1569_v37 = vsub.f32 1.0, %v1568_v31  ;;  %vm1589_vm5 = vmor %vm1587_vm4, %vm1588_vm15 }
 0x3e3   : > { %v1584_v36 = vsub.f32 1.0, %v1583_v32 }
 0x3e4   : > { %v1570_v8 = vmul.f32 %v1770_v17, %v1569_v37 }
 0x3e5   : > { %v1585_v30 = vmul.f32 %v1772_v15, %v1584_v36 }
 0x3e6   : > { %v1571_v35 = vadd.f32 %v1770_v17, %v1570_v8 }
 0x3e7   : > { %v1586_v13 = vadd.f32 %v1772_v15, %v1585_v30 }
 0x3e8   : > { %v1575_v25 = vsel %vm1574_vm3, %v1770_v17, %v1571_v35 }
 0x3e9   : > { %v1590_v47 = vsel %vm1589_vm5, %v1772_v15, %v1586_v13  ;;  %v1580_v50 = vsel %vm1577_vm6, %v1579_v48, %v1575_v25 }
 0x3ea   : > { %v1595_v10 = vsel %vm1592_vm7, %v1594_v45, %v1590_v47  ;;  %v1597_v53 = vperm.slane %v1580_v50, 0 }
 0x3eb   : > { %v1598_v46 = vperm.slane %v1595_v10, 0 }
 0x3ed   : > { %v1601_v58 = vrot.slane %v1598_v46, 4 }
 0x3ef   : > { %v1602_v7 = vsel %vm845_vm0, %v1597_v53, %v1601_v58 }
 0x3f0   : > { %v1604_v54 = vmul.f32 %v1602_v7, %v1902_v55 }
 0x3f2   : > { %1605 = vst [vmem:[%s244_s16] sm:$0xff] %v1604_v54 }
 0x3f3 PF: > { %s15_s18 = sadd.s32 1, %s1779_s18  }
 0x3f4   : > { %p12_p4 = scmp.ge.s32.totalorder %s15_s18, 4  }
 0x3f6   :  { %14 = sbr.rel (!%p12_p4) target bundleno = 1 (0x1), region = 73 }

</bundles_post_ra>
